<compile_context>
chip_gen: v7x
topology: tpu7x:2x2x1
jax: 0.10.0
libtpu: 0.0.40
codegen_flags: <defaults>
</compile_context>

<pallas_src>
import functools

import jax
import jax.numpy as jnp
import numpy as np
from jax.experimental import pallas as pl
from jax.experimental.pallas import tpu as pltpu


def _bce_logits(x, y):
    # numerically-stable BCEWithLogits: max(x,0) - x*y + log(1 + exp(-|x|))
    return jnp.maximum(x, 0.0) - x * y + jnp.log(1.0 + jnp.exp(-jnp.abs(x)))


def det_loss_kernel(boxesT_ref, scalesT_ref, ctx_ref, score_ref, tfeat_ref,
                    fb_ref, out_ref, *, S):
    f32 = jnp.float32
    boxesT = boxesT_ref[...]        # (Bb, 4, P)  lane-major box coords
    scalesT = scalesT_ref[...]      # (Bb, S, P)  lane-major scale logits
    ctx_row = ctx_ref[...]          # (Bb, 1, P)  context logits
    scores = score_ref[...]         # (Bb, 1, P)  score logits
    tfeat = tfeat_ref[...]          # (Bb, N, 6)  [x1,y1,x2,y2, cls, ctx]
    fb = fb_ref[...]                # (Bb, 1, 4)  [box_fb, scale_fb, ctx_fb, 0]

    Bb, _, P = boxesT.shape
    N = tfeat.shape[1]

    # ---- coordinate views (targets on sublanes, predictions on lanes)
    px1 = boxesT[:, 0:1, :]; py1 = boxesT[:, 1:2, :]       # (Bb,1,P)
    px2 = boxesT[:, 2:3, :]; py2 = boxesT[:, 3:4, :]
    tx1 = tfeat[:, :, 0:1]; ty1 = tfeat[:, :, 1:2]         # (Bb,N,1)
    tx2 = tfeat[:, :, 2:3]; ty2 = tfeat[:, :, 3:4]
    # class ids travel through f32 -> exact for ids < 2^24 (S is tiny).
    t_cls = tfeat[:, :, 4:5].astype(jnp.int32)             # (Bb,N,1)
    t_ctx = tfeat[:, :, 5:6]                               # (Bb,N,1)

    # ---- IoU matrix ious[b, n, p] (== torchvision box_iou(pred, tgt).T)
    area_p = (px2 - px1) * (py2 - py1)                     # (Bb,1,P)
    area_t = (tx2 - tx1) * (ty2 - ty1)                     # (Bb,N,1)
    iw = jnp.maximum(jnp.minimum(px2, tx2) - jnp.maximum(px1, tx1), 0.0)
    ih = jnp.maximum(jnp.minimum(py2, ty2) - jnp.maximum(py1, ty1), 0.0)
    inter = iw * ih                                        # (Bb,N,P)
    union = area_p + area_t - inter
    # EUP approx reciprocal + one Newton step (~1e-7 rel err) instead of a
    # full-precision divide over the Bb*N*P population.
    r = pl.reciprocal(union, approx=True)
    r = r * (2.0 - union * r)
    ious = inter * r                                       # (Bb,N,P)

    # ---- best prediction per target (first-occurrence argmax over P)
    best_iou = jnp.max(ious, axis=2, keepdims=True)        # (Bb,N,1)
    p_iota = jax.lax.broadcasted_iota(jnp.int32, (Bb, N, P), 2)
    best_idx = jnp.min(jnp.where(ious >= best_iou, p_iota, P),
                       axis=2, keepdims=True)              # (Bb,N,1)
    onehot = (p_iota == best_idx).astype(f32)              # (Bb,N,P)

    valid = (best_iou > 0.5).astype(f32)                   # (Bb,N,1)
    vcount = jnp.sum(valid, axis=1, keepdims=True)         # (Bb,1,1)
    denom = jnp.maximum(vcount, 1.0)
    any_valid = vcount > 0.0                               # (Bb,1,1)

    # masked lane-reduction gather: row (Bb,1,P) -> matched value (Bb,N,1)
    def gather_row(row):
        return jnp.sum(onehot * row, axis=2, keepdims=True)

    # ---- box loss: SmoothL1(beta=0.1), IoU-weighted, mean over (V,4)
    beta = 0.1
    w = best_iou * valid                                   # (Bb,N,1)
    sl1_sum = jnp.zeros((Bb, N, 1), f32)
    for c in range(4):
        d = gather_row(boxesT[:, c:c + 1, :]) - tfeat[:, :, c:c + 1]
        ad = jnp.abs(d)
        sl1_sum = sl1_sum + jnp.where(ad < beta, (0.5 / beta) * d * d,
                                      ad - 0.5 * beta)
    box_valid = jnp.sum(sl1_sum * w, axis=1, keepdims=True) / (denom * 4.0)

    # ---- scale loss: CrossEntropy(gathered scale logits, target class)
    g_s = [gather_row(scalesT[:, s:s + 1, :]) for s in range(S)]  # S x (Bb,N,1)
    m = g_s[0]
    for s in range(1, S):
        m = jnp.maximum(m, g_s[s])
    sumexp = jnp.zeros((Bb, N, 1), f32)
    logit_t = jnp.zeros((Bb, N, 1), f32)
    for s in range(S):
        sumexp = sumexp + jnp.exp(g_s[s] - m)
        logit_t = logit_t + jnp.where(t_cls == s, g_s[s], 0.0)
    ce = (m + jnp.log(sumexp)) - logit_t                   # (Bb,N,1)
    scale_valid = jnp.sum(ce * valid, axis=1, keepdims=True) / denom

    # ---- context loss: BCEWithLogits on matched context logits
    g_ctx = gather_row(ctx_row)                            # (Bb,N,1)
    ctx_valid = jnp.sum(_bce_logits(g_ctx, t_ctx) * valid,
                        axis=1, keepdims=True) / denom

    # ---- confidence loss: scatter best IoUs into a length-P target
    #      (duplicate indices resolved last-write-wins, like PyTorch indexing)
    M = onehot * valid                                     # (Bb,N,P)
    n_iota = jax.lax.broadcasted_iota(jnp.int32, (Bb, N, P), 1)
    n_sel = jnp.max(jnp.where(M > 0.0, n_iota, -1),
                    axis=1, keepdims=True)                 # (Bb,1,P)
    sel_last = jnp.where((n_iota == n_sel) & (M > 0.0), best_iou, 0.0)
    conf_target = jnp.sum(sel_last, axis=1, keepdims=True)  # (Bb,1,P)
    # all-zero conf_target when no valid match == the reference fallback
    # BCE(scores, 0), so this covers both branches (no 0.1 factor in torch).
    conf_b = jnp.sum(_bce_logits(scores, conf_target),
                     axis=2, keepdims=True) * (1.0 / P)    # (Bb,1,1)

    # ---- fallback regularizers come precomputed from the wrapper
    box_l = jnp.where(any_valid, box_valid, fb[:, :, 0:1])
    scale_l = jnp.where(any_valid, scale_valid, fb[:, :, 1:2])
    ctx_l = jnp.where(any_valid, ctx_valid, fb[:, :, 2:3])

    # ---- per-block sums packed into one lane-dense (1,1,128) output row
    lane = jax.lax.broadcasted_iota(jnp.int32, (1, 1, 128), 2)
    row = (jnp.where(lane == 0, jnp.sum(box_l), 0.0)
           + jnp.where(lane == 1, jnp.sum(scale_l), 0.0)
           + jnp.where(lane == 2, jnp.sum(ctx_l), 0.0)
           + jnp.where(lane == 3, jnp.sum(conf_b), 0.0))
    out_ref[...] = row.astype(out_ref.dtype)


def _block_plan(B, N, P, S, max_block=64):
    """vreg- and VMEM-budgeted batch block size + explicit VMEM limit."""
    ceil = lambda a, b: -(-a // b)
    # vreg budget: ~10 live (bb,N,P) f32 intermediates (ious, onehot, iotas,
    # masks, gather temporaries) must fit the 64-entry vreg file with headroom.
    vregs_per_b = ceil(N, 8) * ceil(P, 128)
    live, vreg_budget = 10, 48
    by_vreg = max(1, vreg_budget // (live * vregs_per_b))
    # VMEM budget: double-buffered input blocks, f32, padded to (8,128) tiles.
    tile = lambda r, c: ceil(r, 8) * 8 * ceil(c, 128) * 128 * 4
    per_b = (tile(4, P) + tile(S, P) + 2 * tile(1, P)
             + tile(N, 6) + tile(1, 4))
    vmem_budget = 8 << 20            # conservative slice of the v5e default
    by_vmem = max(1, vmem_budget // (2 * per_b))
    bb = max(1, min(B, max_block, by_vreg, by_vmem))
    # v7x megacore: keep at least 2 grid steps so the "parallel" axis can
    # span both TensorCores (harmless on single-TC v5e/v6e).
    if bb >= B and B >= 2:
        bb = B // 2
    while B % bb:                    # snap down to a divisor of B (exact grid)
        bb -= 1
    # explicit scoped-VMEM request: well below v7x's 64 MiB physical VMEM.
    vmem_limit = int(min(max(4 * 2 * per_b * bb + (1 << 20), 8 << 20), 48 << 20))
    return bb, vmem_limit


def detection_loss(pred_scores, pred_boxes, pred_scales, pred_context, targets,
                   box_weight=2.0, scale_weight=1.0, context_weight=1.5,
                   conf_weight=1.0, block_b=None):
    f32 = jnp.float32
    B, P, _ = pred_boxes.shape
    S = pred_scales.shape[-1]
    N = targets['boxes'].shape[1]

    pb = pred_boxes.astype(f32)
    ps = pred_scales.astype(f32)
    pc = pred_context.astype(f32).reshape(B, P)
    sc = pred_scores.astype(f32).reshape(B, P)

    # lane-major prediction operands (transposes needed for the matching
    # layout; context/scores reshapes are free). No concatenated featT is
    # materialized in HBM any more.
    boxesT = jnp.transpose(pb, (0, 2, 1))                   # (B, 4, P)
    scalesT = jnp.transpose(ps, (0, 2, 1))                  # (B, S, P)
    ctx = pc.reshape(B, 1, P)
    scr = sc.reshape(B, 1, P)

    # packed target features: [x1, y1, x2, y2, scale_class, context_score]
    tfeat = jnp.concatenate([
        targets['boxes'].astype(f32),                       # (B,N,4)
        targets['scales'].astype(f32).reshape(B, N, 1),
        targets['context_scores'].astype(f32).reshape(B, N, 1),
    ], axis=2)                                              # (B, N, 6)

    # fallback regularizers (prediction-only) hoisted out of the kernel hot
    # path; XLA fuses them with the transposes above.
    box_fb = 0.1 * jnp.mean(jnp.abs(pb), axis=(1, 2))
    scale_fb = 0.1 * jnp.mean(-(ps * jnp.log(ps + 1e-6)), axis=(1, 2))
    ctx_fb = 0.1 * jnp.mean(_bce_logits(pc, jnp.zeros_like(pc)), axis=1)
    fb = jnp.stack([box_fb, scale_fb, ctx_fb, jnp.zeros_like(box_fb)],
                   axis=-1).reshape(B, 1, 4)                # (B, 1, 4)

    if block_b is None:
        bb, vmem_limit = _block_plan(B, N, P, S)
    else:
        bb = block_b
        _, vmem_limit = _block_plan(B, N, P, S)
    G = B // bb

    out = pl.pallas_call(
        functools.partial(det_loss_kernel, S=S),
        out_shape=jax.ShapeDtypeStruct((G, 1, 128), f32),
        grid_spec=pltpu.PrefetchScalarGridSpec(
            num_scalar_prefetch=0,
            grid=(G,),
            in_specs=[
                pl.BlockSpec((bb, 4, P), lambda g: (g, 0, 0)),
                pl.BlockSpec((bb, S, P), lambda g: (g, 0, 0)),
                pl.BlockSpec((bb, 1, P), lambda g: (g, 0, 0)),
                pl.BlockSpec((bb, 1, P), lambda g: (g, 0, 0)),
                pl.BlockSpec((bb, N, 6), lambda g: (g, 0, 0)),
                pl.BlockSpec((bb, 1, 4), lambda g: (g, 0, 0)),
            ],
            out_specs=pl.BlockSpec((1, 1, 128), lambda g: (g, 0, 0)),
        ),
        compiler_params=pltpu.CompilerParams(
            dimension_semantics=("parallel",),
            vmem_limit_bytes=vmem_limit),
    )(boxesT, scalesT, ctx, scr, tfeat, fb)

    sums = jnp.sum(out[:, 0, :4], axis=0)                   # (4,) block sums
    box_loss = sums[0] / B
    scale_loss = sums[1] / B
    context_loss = sums[2] / B
    conf_loss = sums[3] / B

    w_box = box_weight * box_loss
    w_scale = scale_weight * scale_loss
    w_ctx = context_weight * context_loss
    w_conf = conf_weight * conf_loss
    total = w_box + w_scale + w_ctx + w_conf
    # TODO(synk): the reference also prints a warning when the loss is
    # NaN/Inf; only the 0.1 fallback value is reproduced here.
    total = jnp.where(jnp.isnan(total) | jnp.isinf(total),
                      jnp.float32(0.1), total)
    return {'loss': total, 'box_loss': w_box, 'scale_loss': w_scale,
            'context_loss': w_ctx, 'conf_loss': w_conf}


# ---------------------- pure-JAX reference (PyTorch semantics) ----------------
def reference_loss(pred_scores, pred_boxes, pred_scales, pred_context, targets,
                   box_weight=2.0, scale_weight=1.0, context_weight=1.5,
                   conf_weight=1.0):
    B, P, _ = pred_boxes.shape
    box_ls, scale_ls, ctx_ls, conf_ls = [], [], [], []
    for b in range(B):
        pb = pred_boxes[b]
        tb = targets['boxes'][b]
        area_p = (pb[:, 2] - pb[:, 0]) * (pb[:, 3] - pb[:, 1])
        area_t = (tb[:, 2] - tb[:, 0]) * (tb[:, 3] - tb[:, 1])
        lt = jnp.maximum(pb[:, None, :2], tb[None, :, :2])
        rb = jnp.minimum(pb[:, None, 2:], tb[None, :, 2:])
        wh = jnp.clip(rb - lt, 0.0)
        inter = wh[..., 0] * wh[..., 1]
        ious = inter / (area_p[:, None] + area_t[None, :] - inter)   # (P, N)
        best_ious = jnp.max(ious, axis=0)
        best_idx = jnp.argmax(ious, axis=0)
        valid = best_ious > 0.5
        if bool(jnp.any(valid)):
            idx = best_idx[valid]
            gb = pb[idx]
            d = gb - tb[valid]
            ad = jnp.abs(d)
            sl1 = jnp.where(ad < 0.1, 0.5 * d * d / 0.1, ad - 0.05)
            box_ls.append(jnp.mean(sl1 * best_ious[valid][:, None]))
            logits = pred_scales[b][idx]
            t = targets['scales'][b][valid].astype(jnp.int32)
            lse = jax.nn.logsumexp(logits, axis=-1)
            ce = lse - logits[jnp.arange(logits.shape[0]), t]
            scale_ls.append(jnp.mean(ce))
            ctx_ls.append(jnp.mean(_bce_logits(pred_context[b][idx],
                                               targets['context_scores'][b][valid])))
            ct = np.zeros(P, np.float32)
            for i, p in enumerate(np.array(idx)):
                ct[p] = float(np.array(best_ious[valid])[i])   # last-write-wins
            conf_ls.append(jnp.mean(_bce_logits(pred_scores[b], jnp.asarray(ct))))
        else:
            box_ls.append(jnp.mean(jnp.abs(pb)) * 0.1)
            scale_ls.append(jnp.mean(-(pred_scales[b]
                                       * jnp.log(pred_scales[b] + 1e-6))) * 0.1)
            ctx_ls.append(jnp.mean(_bce_logits(pred_context[b],
                                               jnp.zeros_like(pred_context[b]))) * 0.1)
            conf_ls.append(jnp.mean(_bce_logits(pred_scores[b],
                                                jnp.zeros_like(pred_scores[b]))))
    box_loss = jnp.mean(jnp.stack(box_ls))
    scale_loss = jnp.mean(jnp.stack(scale_ls))
    context_loss = jnp.mean(jnp.stack(ctx_ls))
    conf_loss = jnp.mean(jnp.stack(conf_ls))
    total = (box_weight * box_loss + scale_weight * scale_loss
             + context_weight * context_loss + conf_weight * conf_loss)
    return {'loss': total, 'box_loss': box_weight * box_loss,
            'scale_loss': scale_weight * scale_loss,
            'context_loss': context_weight * context_loss,
            'conf_loss': conf_weight * conf_loss}


if __name__ == "__main__":
    B, P, N, S = 8, 16, 8, 4
    key = jax.random.PRNGKey(0)
    ks = jax.random.split(key, 8)

    xy = jax.random.uniform(ks[0], (B, P, 2), minval=0.0, maxval=0.5)
    wh = jax.random.uniform(ks[1], (B, P, 2), minval=0.1, maxval=0.5)
    pred_boxes = jnp.concatenate([xy, xy + wh], axis=-1)            # (B, P, 4)
    pred_scales = jax.random.uniform(ks[2], (B, P, S),
                                     minval=0.05, maxval=1.0)       # (B, P, S)
    pred_context = jax.random.normal(ks[3], (B, P))                 # (B, P)
    pred_scores = jax.random.normal(ks[4], (B, P))                  # (B, P)

    # batches 0..B/2-1: targets coincide with the first N predictions (valid
    # branch); batches B/2..B-1: targets shifted far away (fallback branch).
    target_boxes = pred_boxes[:, :N, :]
    shift = jnp.where(jnp.arange(B)[:, None, None] >= B // 2, 10.0, 0.0)
    target_boxes = target_boxes + shift
    targets = {
        'boxes': target_boxes,
        'scales': jax.random.randint(ks[5], (B, N), 0, S),
        'context_scores': (jax.random.uniform(ks[6], (B, N)) > 0.5
                           ).astype(jnp.float32),
        'confidence': jax.random.uniform(ks[7], (B, N)),  # unused by forward
    }

    loss_fn = jax.jit(detection_loss)
    out = loss_fn(pred_scores, pred_boxes, pred_scales, pred_context, targets)
    jax.block_until_ready(out['loss'])

    ref = reference_loss(pred_scores, pred_boxes, pred_scales, pred_context,
                         targets)
    for k in ('loss', 'box_loss', 'scale_loss', 'context_loss', 'conf_loss'):
        np.testing.assert_allclose(np.array(out[k]), np.array(ref[k]),
                                   rtol=1e-4, atol=1e-5)
    print("KERNEL_OK")
</pallas_src>

<mosaic_0001>
module attributes {stable_mosaic.version = 11 : i64} {
  func.func @det_loss_kernel(%arg0: i32, %arg1: memref<4x4x16xf32, #tpu.memory_space<vmem>>, %arg2: memref<4x4x16xf32, #tpu.memory_space<vmem>>, %arg3: memref<4x1x16xf32, #tpu.memory_space<vmem>>, %arg4: memref<4x1x16xf32, #tpu.memory_space<vmem>>, %arg5: memref<4x8x6xf32, #tpu.memory_space<vmem>>, %arg6: memref<4x1x4xf32, #tpu.memory_space<vmem>>, %arg7: memref<1x1x128xf32, #tpu.memory_space<vmem>>) attributes {dimension_semantics = [#tpu.dimension_semantics<parallel>], iteration_bounds = array<i64: 2>, scalar_prefetch = 0 : i64, scratch_operands = 0 : i64, tpu.core_type = #tpu.core_type<tc>, window_params = [{transform_indices = @transform_0, window_bounds = array<i64: 4, 4, 16>}, {transform_indices = @transform_1, window_bounds = array<i64: 4, 4, 16>}, {transform_indices = @transform_2, window_bounds = array<i64: 4, 1, 16>}, {transform_indices = @transform_3, window_bounds = array<i64: 4, 1, 16>}, {transform_indices = @transform_4, window_bounds = array<i64: 4, 8, 6>}, {transform_indices = @transform_5, window_bounds = array<i64: 4, 1, 4>}, {transform_indices = @transform_6, window_bounds = array<i64: 1, 1, 128>}]} {
    %c0 = arith.constant 0 : index
    %c0_0 = arith.constant 0 : index
    %c0_1 = arith.constant 0 : index
    %0 = vector.load %arg1[%c0, %c0_0, %c0_1] : memref<4x4x16xf32, #tpu.memory_space<vmem>>, vector<4x4x16xf32>
    %c0_2 = arith.constant 0 : index
    %c0_3 = arith.constant 0 : index
    %c0_4 = arith.constant 0 : index
    %1 = vector.load %arg2[%c0_2, %c0_3, %c0_4] : memref<4x4x16xf32, #tpu.memory_space<vmem>>, vector<4x4x16xf32>
    %c0_5 = arith.constant 0 : index
    %c0_6 = arith.constant 0 : index
    %c0_7 = arith.constant 0 : index
    %2 = vector.load %arg3[%c0_5, %c0_6, %c0_7] : memref<4x1x16xf32, #tpu.memory_space<vmem>>, vector<4x1x16xf32>
    %c0_8 = arith.constant 0 : index
    %c0_9 = arith.constant 0 : index
    %c0_10 = arith.constant 0 : index
    %3 = vector.load %arg4[%c0_8, %c0_9, %c0_10] : memref<4x1x16xf32, #tpu.memory_space<vmem>>, vector<4x1x16xf32>
    %c0_11 = arith.constant 0 : index
    %c0_12 = arith.constant 0 : index
    %c0_13 = arith.constant 0 : index
    %4 = vector.load %arg5[%c0_11, %c0_12, %c0_13] : memref<4x8x6xf32, #tpu.memory_space<vmem>>, vector<4x8x6xf32>
    %c0_14 = arith.constant 0 : index
    %c0_15 = arith.constant 0 : index
    %c0_16 = arith.constant 0 : index
    %5 = vector.load %arg6[%c0_14, %c0_15, %c0_16] : memref<4x1x4xf32, #tpu.memory_space<vmem>>, vector<4x1x4xf32>
    %6 = vector.extract_strided_slice %0 {offsets = [0, 0, 0], sizes = [4, 1, 16], strides = [1, 1, 1]} : vector<4x4x16xf32> to vector<4x1x16xf32>
    %7 = vector.extract_strided_slice %0 {offsets = [0, 1, 0], sizes = [4, 1, 16], strides = [1, 1, 1]} : vector<4x4x16xf32> to vector<4x1x16xf32>
    %8 = vector.extract_strided_slice %0 {offsets = [0, 2, 0], sizes = [4, 1, 16], strides = [1, 1, 1]} : vector<4x4x16xf32> to vector<4x1x16xf32>
    %9 = vector.extract_strided_slice %0 {offsets = [0, 3, 0], sizes = [4, 1, 16], strides = [1, 1, 1]} : vector<4x4x16xf32> to vector<4x1x16xf32>
    %10 = vector.extract_strided_slice %4 {offsets = [0, 0, 0], sizes = [4, 8, 1], strides = [1, 1, 1]} : vector<4x8x6xf32> to vector<4x8x1xf32>
    %11 = vector.extract_strided_slice %4 {offsets = [0, 0, 1], sizes = [4, 8, 1], strides = [1, 1, 1]} : vector<4x8x6xf32> to vector<4x8x1xf32>
    %12 = vector.extract_strided_slice %4 {offsets = [0, 0, 2], sizes = [4, 8, 1], strides = [1, 1, 1]} : vector<4x8x6xf32> to vector<4x8x1xf32>
    %13 = vector.extract_strided_slice %4 {offsets = [0, 0, 3], sizes = [4, 8, 1], strides = [1, 1, 1]} : vector<4x8x6xf32> to vector<4x8x1xf32>
    %14 = vector.extract_strided_slice %4 {offsets = [0, 0, 4], sizes = [4, 8, 1], strides = [1, 1, 1]} : vector<4x8x6xf32> to vector<4x8x1xf32>
    %15 = arith.fptosi %14 : vector<4x8x1xf32> to vector<4x8x1xi32>
    %16 = vector.extract_strided_slice %4 {offsets = [0, 0, 5], sizes = [4, 8, 1], strides = [1, 1, 1]} : vector<4x8x6xf32> to vector<4x8x1xf32>
    %17 = arith.subf %8, %6 : vector<4x1x16xf32>
    %18 = arith.subf %9, %7 : vector<4x1x16xf32>
    %19 = arith.mulf %17, %18 : vector<4x1x16xf32>
    %20 = arith.subf %12, %10 : vector<4x8x1xf32>
    %21 = arith.subf %13, %11 : vector<4x8x1xf32>
    %22 = arith.mulf %20, %21 : vector<4x8x1xf32>
    %23 = vector.broadcast %8 : vector<4x1x16xf32> to vector<4x8x16xf32>
    %24 = vector.broadcast %12 : vector<4x8x1xf32> to vector<4x8x16xf32>
    %25 = arith.minimumf %23, %24 : vector<4x8x16xf32>
    %26 = vector.broadcast %6 : vector<4x1x16xf32> to vector<4x8x16xf32>
    %27 = vector.broadcast %10 : vector<4x8x1xf32> to vector<4x8x16xf32>
    %28 = arith.maximumf %26, %27 : vector<4x8x16xf32>
    %29 = arith.subf %25, %28 : vector<4x8x16xf32>
    %cst = arith.constant 0.000000e+00 : f32
    %30 = vector.broadcast %cst : f32 to vector<4x8x16xf32>
    %31 = arith.maximumf %29, %30 : vector<4x8x16xf32>
    %32 = vector.broadcast %9 : vector<4x1x16xf32> to vector<4x8x16xf32>
    %33 = vector.broadcast %13 : vector<4x8x1xf32> to vector<4x8x16xf32>
    %34 = arith.minimumf %32, %33 : vector<4x8x16xf32>
    %35 = vector.broadcast %7 : vector<4x1x16xf32> to vector<4x8x16xf32>
    %36 = vector.broadcast %11 : vector<4x8x1xf32> to vector<4x8x16xf32>
    %37 = arith.maximumf %35, %36 : vector<4x8x16xf32>
    %38 = arith.subf %34, %37 : vector<4x8x16xf32>
    %cst_17 = arith.constant 0.000000e+00 : f32
    %39 = vector.broadcast %cst_17 : f32 to vector<4x8x16xf32>
    %40 = arith.maximumf %38, %39 : vector<4x8x16xf32>
    %41 = arith.mulf %31, %40 : vector<4x8x16xf32>
    %42 = vector.broadcast %19 : vector<4x1x16xf32> to vector<4x8x16xf32>
    %43 = vector.broadcast %22 : vector<4x8x1xf32> to vector<4x8x16xf32>
    %44 = arith.addf %42, %43 : vector<4x8x16xf32>
    %45 = arith.subf %44, %41 : vector<4x8x16xf32>
    %46 = tpu.reciprocal %45 {approx = true} : vector<4x8x16xf32> -> vector<4x8x16xf32>
    %47 = arith.mulf %45, %46 : vector<4x8x16xf32>
    %cst_18 = arith.constant 2.000000e+00 : f32
    %48 = vector.broadcast %cst_18 : f32 to vector<4x8x16xf32>
    %49 = arith.subf %48, %47 : vector<4x8x16xf32>
    %50 = arith.mulf %46, %49 : vector<4x8x16xf32>
    %51 = arith.mulf %41, %50 : vector<4x8x16xf32>
    %cst_19 = arith.constant dense<0xFF800000> : vector<4x8xf32>
    %52 = vector.multi_reduction <maximumf>, %51, %cst_19 [2] : vector<4x8x16xf32> to vector<4x8xf32>
    %53 = vector.shape_cast %52 : vector<4x8xf32> to vector<4x8x1xf32>
    %54 = tpu.iota {dimensions = array<i32: 2>} : vector<4x8x16xi32>
    %55 = vector.broadcast %53 : vector<4x8x1xf32> to vector<4x8x16xf32>
    %56 = arith.cmpf oge, %51, %55 : vector<4x8x16xf32>
    %c16_i32 = arith.constant 16 : i32
    %57 = vector.broadcast %c16_i32 : i32 to vector<4x8x16xi32>
    %58 = arith.select %56, %54, %57 : vector<4x8x16xi1>, vector<4x8x16xi32>
    %cst_20 = arith.constant dense<2147483647> : vector<4x8xi32>
    %59 = vector.multi_reduction <minsi>, %58, %cst_20 [2] : vector<4x8x16xi32> to vector<4x8xi32>
    %60 = vector.shape_cast %59 : vector<4x8xi32> to vector<4x8x1xi32>
    %61 = vector.broadcast %60 : vector<4x8x1xi32> to vector<4x8x16xi32>
    %62 = arith.cmpi eq, %54, %61 : vector<4x8x16xi32>
    %63 = arith.extui %62 : vector<4x8x16xi1> to vector<4x8x16xi32>
    %64 = arith.sitofp %63 : vector<4x8x16xi32> to vector<4x8x16xf32>
    %cst_21 = arith.constant 5.000000e-01 : f32
    %65 = vector.broadcast %cst_21 : f32 to vector<4x8x1xf32>
    %66 = arith.cmpf ogt, %53, %65 : vector<4x8x1xf32>
    %67 = arith.extui %66 : vector<4x8x1xi1> to vector<4x8x1xi32>
    %68 = arith.sitofp %67 : vector<4x8x1xi32> to vector<4x8x1xf32>
    %cst_22 = arith.constant dense<0.000000e+00> : vector<4x1xf32>
    %69 = vector.multi_reduction <add>, %68, %cst_22 [1] : vector<4x8x1xf32> to vector<4x1xf32>
    %70 = vector.shape_cast %69 : vector<4x1xf32> to vector<4x1x1xf32>
    %cst_23 = arith.constant 1.000000e+00 : f32
    %71 = vector.broadcast %cst_23 : f32 to vector<4x1x1xf32>
    %72 = arith.maximumf %70, %71 : vector<4x1x1xf32>
    %cst_24 = arith.constant 0.000000e+00 : f32
    %73 = vector.broadcast %cst_24 : f32 to vector<4x1x1xf32>
    %74 = arith.cmpf ogt, %70, %73 : vector<4x1x1xf32>
    %75 = arith.mulf %53, %68 : vector<4x8x1xf32>
    %cst_25 = arith.constant 0.000000e+00 : f32
    %76 = vector.broadcast %cst_25 : f32 to vector<4x8x1xf32>
    %77 = vector.extract_strided_slice %0 {offsets = [0, 0, 0], sizes = [4, 1, 16], strides = [1, 1, 1]} : vector<4x4x16xf32> to vector<4x1x16xf32>
    %78 = vector.broadcast %77 : vector<4x1x16xf32> to vector<4x8x16xf32>
    %79 = arith.mulf %64, %78 : vector<4x8x16xf32>
    %cst_26 = arith.constant dense<0.000000e+00> : vector<4x8xf32>
    %80 = vector.multi_reduction <add>, %79, %cst_26 [2] : vector<4x8x16xf32> to vector<4x8xf32>
    %81 = vector.shape_cast %80 : vector<4x8xf32> to vector<4x8x1xf32>
    %82 = vector.extract_strided_slice %4 {offsets = [0, 0, 0], sizes = [4, 8, 1], strides = [1, 1, 1]} : vector<4x8x6xf32> to vector<4x8x1xf32>
    %83 = arith.subf %81, %82 : vector<4x8x1xf32>
    %84 = math.absf %83 : vector<4x8x1xf32>
    %cst_27 = arith.constant 1.000000e-01 : f32
    %85 = vector.broadcast %cst_27 : f32 to vector<4x8x1xf32>
    %86 = arith.cmpf olt, %84, %85 : vector<4x8x1xf32>
    %cst_28 = arith.constant 5.000000e+00 : f32
    %87 = vector.broadcast %cst_28 : f32 to vector<4x8x1xf32>
    %88 = arith.mulf %87, %83 : vector<4x8x1xf32>
    %89 = arith.mulf %88, %83 : vector<4x8x1xf32>
    %cst_29 = arith.constant 5.000000e-02 : f32
    %90 = vector.broadcast %cst_29 : f32 to vector<4x8x1xf32>
    %91 = arith.subf %84, %90 : vector<4x8x1xf32>
    %92 = arith.select %86, %89, %91 : vector<4x8x1xi1>, vector<4x8x1xf32>
    %93 = arith.addf %76, %92 : vector<4x8x1xf32>
    %94 = vector.extract_strided_slice %0 {offsets = [0, 1, 0], sizes = [4, 1, 16], strides = [1, 1, 1]} : vector<4x4x16xf32> to vector<4x1x16xf32>
    %95 = vector.broadcast %94 : vector<4x1x16xf32> to vector<4x8x16xf32>
    %96 = arith.mulf %64, %95 : vector<4x8x16xf32>
    %cst_30 = arith.constant dense<0.000000e+00> : vector<4x8xf32>
    %97 = vector.multi_reduction <add>, %96, %cst_30 [2] : vector<4x8x16xf32> to vector<4x8xf32>
    %98 = vector.shape_cast %97 : vector<4x8xf32> to vector<4x8x1xf32>
    %99 = vector.extract_strided_slice %4 {offsets = [0, 0, 1], sizes = [4, 8, 1], strides = [1, 1, 1]} : vector<4x8x6xf32> to vector<4x8x1xf32>
    %100 = arith.subf %98, %99 : vector<4x8x1xf32>
    %101 = math.absf %100 : vector<4x8x1xf32>
    %cst_31 = arith.constant 1.000000e-01 : f32
    %102 = vector.broadcast %cst_31 : f32 to vector<4x8x1xf32>
    %103 = arith.cmpf olt, %101, %102 : vector<4x8x1xf32>
    %cst_32 = arith.constant 5.000000e+00 : f32
    %104 = vector.broadcast %cst_32 : f32 to vector<4x8x1xf32>
    %105 = arith.mulf %104, %100 : vector<4x8x1xf32>
    %106 = arith.mulf %105, %100 : vector<4x8x1xf32>
    %cst_33 = arith.constant 5.000000e-02 : f32
    %107 = vector.broadcast %cst_33 : f32 to vector<4x8x1xf32>
    %108 = arith.subf %101, %107 : vector<4x8x1xf32>
    %109 = arith.select %103, %106, %108 : vector<4x8x1xi1>, vector<4x8x1xf32>
    %110 = arith.addf %93, %109 : vector<4x8x1xf32>
    %111 = vector.extract_strided_slice %0 {offsets = [0, 2, 0], sizes = [4, 1, 16], strides = [1, 1, 1]} : vector<4x4x16xf32> to vector<4x1x16xf32>
    %112 = vector.broadcast %111 : vector<4x1x16xf32> to vector<4x8x16xf32>
    %113 = arith.mulf %64, %112 : vector<4x8x16xf32>
    %cst_34 = arith.constant dense<0.000000e+00> : vector<4x8xf32>
    %114 = vector.multi_reduction <add>, %113, %cst_34 [2] : vector<4x8x16xf32> to vector<4x8xf32>
    %115 = vector.shape_cast %114 : vector<4x8xf32> to vector<4x8x1xf32>
    %116 = vector.extract_strided_slice %4 {offsets = [0, 0, 2], sizes = [4, 8, 1], strides = [1, 1, 1]} : vector<4x8x6xf32> to vector<4x8x1xf32>
    %117 = arith.subf %115, %116 : vector<4x8x1xf32>
    %118 = math.absf %117 : vector<4x8x1xf32>
    %cst_35 = arith.constant 1.000000e-01 : f32
    %119 = vector.broadcast %cst_35 : f32 to vector<4x8x1xf32>
    %120 = arith.cmpf olt, %118, %119 : vector<4x8x1xf32>
    %cst_36 = arith.constant 5.000000e+00 : f32
    %121 = vector.broadcast %cst_36 : f32 to vector<4x8x1xf32>
    %122 = arith.mulf %121, %117 : vector<4x8x1xf32>
    %123 = arith.mulf %122, %117 : vector<4x8x1xf32>
    %cst_37 = arith.constant 5.000000e-02 : f32
    %124 = vector.broadcast %cst_37 : f32 to vector<4x8x1xf32>
    %125 = arith.subf %118, %124 : vector<4x8x1xf32>
    %126 = arith.select %120, %123, %125 : vector<4x8x1xi1>, vector<4x8x1xf32>
    %127 = arith.addf %110, %126 : vector<4x8x1xf32>
    %128 = vector.extract_strided_slice %0 {offsets = [0, 3, 0], sizes = [4, 1, 16], strides = [1, 1, 1]} : vector<4x4x16xf32> to vector<4x1x16xf32>
    %129 = vector.broadcast %128 : vector<4x1x16xf32> to vector<4x8x16xf32>
    %130 = arith.mulf %64, %129 : vector<4x8x16xf32>
    %cst_38 = arith.constant dense<0.000000e+00> : vector<4x8xf32>
    %131 = vector.multi_reduction <add>, %130, %cst_38 [2] : vector<4x8x16xf32> to vector<4x8xf32>
    %132 = vector.shape_cast %131 : vector<4x8xf32> to vector<4x8x1xf32>
    %133 = vector.extract_strided_slice %4 {offsets = [0, 0, 3], sizes = [4, 8, 1], strides = [1, 1, 1]} : vector<4x8x6xf32> to vector<4x8x1xf32>
    %134 = arith.subf %132, %133 : vector<4x8x1xf32>
    %135 = math.absf %134 : vector<4x8x1xf32>
    %cst_39 = arith.constant 1.000000e-01 : f32
    %136 = vector.broadcast %cst_39 : f32 to vector<4x8x1xf32>
    %137 = arith.cmpf olt, %135, %136 : vector<4x8x1xf32>
    %cst_40 = arith.constant 5.000000e+00 : f32
    %138 = vector.broadcast %cst_40 : f32 to vector<4x8x1xf32>
    %139 = arith.mulf %138, %134 : vector<4x8x1xf32>
    %140 = arith.mulf %139, %134 : vector<4x8x1xf32>
    %cst_41 = arith.constant 5.000000e-02 : f32
    %141 = vector.broadcast %cst_41 : f32 to vector<4x8x1xf32>
    %142 = arith.subf %135, %141 : vector<4x8x1xf32>
    %143 = arith.select %137, %140, %142 : vector<4x8x1xi1>, vector<4x8x1xf32>
    %144 = arith.addf %127, %143 : vector<4x8x1xf32>
    %145 = arith.mulf %144, %75 : vector<4x8x1xf32>
    %cst_42 = arith.constant dense<0.000000e+00> : vector<4x1xf32>
    %146 = vector.multi_reduction <add>, %145, %cst_42 [1] : vector<4x8x1xf32> to vector<4x1xf32>
    %147 = vector.shape_cast %146 : vector<4x1xf32> to vector<4x1x1xf32>
    %cst_43 = arith.constant 4.000000e+00 : f32
    %148 = vector.broadcast %cst_43 : f32 to vector<4x1x1xf32>
    %149 = arith.mulf %72, %148 : vector<4x1x1xf32>
    %150 = arith.divf %147, %149 : vector<4x1x1xf32>
    %151 = vector.extract_strided_slice %1 {offsets = [0, 0, 0], sizes = [4, 1, 16], strides = [1, 1, 1]} : vector<4x4x16xf32> to vector<4x1x16xf32>
    %152 = vector.broadcast %151 : vector<4x1x16xf32> to vector<4x8x16xf32>
    %153 = arith.mulf %64, %152 : vector<4x8x16xf32>
    %cst_44 = arith.constant dense<0.000000e+00> : vector<4x8xf32>
    %154 = vector.multi_reduction <add>, %153, %cst_44 [2] : vector<4x8x16xf32> to vector<4x8xf32>
    %155 = vector.shape_cast %154 : vector<4x8xf32> to vector<4x8x1xf32>
    %156 = vector.extract_strided_slice %1 {offsets = [0, 1, 0], sizes = [4, 1, 16], strides = [1, 1, 1]} : vector<4x4x16xf32> to vector<4x1x16xf32>
    %157 = vector.broadcast %156 : vector<4x1x16xf32> to vector<4x8x16xf32>
    %158 = arith.mulf %64, %157 : vector<4x8x16xf32>
    %cst_45 = arith.constant dense<0.000000e+00> : vector<4x8xf32>
    %159 = vector.multi_reduction <add>, %158, %cst_45 [2] : vector<4x8x16xf32> to vector<4x8xf32>
    %160 = vector.shape_cast %159 : vector<4x8xf32> to vector<4x8x1xf32>
    %161 = vector.extract_strided_slice %1 {offsets = [0, 2, 0], sizes = [4, 1, 16], strides = [1, 1, 1]} : vector<4x4x16xf32> to vector<4x1x16xf32>
    %162 = vector.broadcast %161 : vector<4x1x16xf32> to vector<4x8x16xf32>
    %163 = arith.mulf %64, %162 : vector<4x8x16xf32>
    %cst_46 = arith.constant dense<0.000000e+00> : vector<4x8xf32>
    %164 = vector.multi_reduction <add>, %163, %cst_46 [2] : vector<4x8x16xf32> to vector<4x8xf32>
    %165 = vector.shape_cast %164 : vector<4x8xf32> to vector<4x8x1xf32>
    %166 = vector.extract_strided_slice %1 {offsets = [0, 3, 0], sizes = [4, 1, 16], strides = [1, 1, 1]} : vector<4x4x16xf32> to vector<4x1x16xf32>
    %167 = vector.broadcast %166 : vector<4x1x16xf32> to vector<4x8x16xf32>
    %168 = arith.mulf %64, %167 : vector<4x8x16xf32>
    %cst_47 = arith.constant dense<0.000000e+00> : vector<4x8xf32>
    %169 = vector.multi_reduction <add>, %168, %cst_47 [2] : vector<4x8x16xf32> to vector<4x8xf32>
    %170 = vector.shape_cast %169 : vector<4x8xf32> to vector<4x8x1xf32>
    %171 = arith.maximumf %155, %160 : vector<4x8x1xf32>
    %172 = arith.maximumf %171, %165 : vector<4x8x1xf32>
    %173 = arith.maximumf %172, %170 : vector<4x8x1xf32>
    %cst_48 = arith.constant 0.000000e+00 : f32
    %174 = vector.broadcast %cst_48 : f32 to vector<4x8x1xf32>
    %cst_49 = arith.constant 0.000000e+00 : f32
    %175 = vector.broadcast %cst_49 : f32 to vector<4x8x1xf32>
    %176 = arith.subf %155, %173 : vector<4x8x1xf32>
    %177 = math.exp %176 : vector<4x8x1xf32>
    %178 = arith.addf %174, %177 : vector<4x8x1xf32>
    %c0_i32 = arith.constant 0 : i32
    %179 = vector.broadcast %c0_i32 : i32 to vector<4x8x1xi32>
    %180 = arith.cmpi eq, %15, %179 : vector<4x8x1xi32>
    %cst_50 = arith.constant 0.000000e+00 : f32
    %181 = vector.broadcast %cst_50 : f32 to vector<4x8x1xf32>
    %182 = arith.select %180, %155, %181 : vector<4x8x1xi1>, vector<4x8x1xf32>
    %183 = arith.addf %175, %182 : vector<4x8x1xf32>
    %184 = arith.subf %160, %173 : vector<4x8x1xf32>
    %185 = math.exp %184 : vector<4x8x1xf32>
    %186 = arith.addf %178, %185 : vector<4x8x1xf32>
    %c1_i32 = arith.constant 1 : i32
    %187 = vector.broadcast %c1_i32 : i32 to vector<4x8x1xi32>
    %188 = arith.cmpi eq, %15, %187 : vector<4x8x1xi32>
    %cst_51 = arith.constant 0.000000e+00 : f32
    %189 = vector.broadcast %cst_51 : f32 to vector<4x8x1xf32>
    %190 = arith.select %188, %160, %189 : vector<4x8x1xi1>, vector<4x8x1xf32>
    %191 = arith.addf %183, %190 : vector<4x8x1xf32>
    %192 = arith.subf %165, %173 : vector<4x8x1xf32>
    %193 = math.exp %192 : vector<4x8x1xf32>
    %194 = arith.addf %186, %193 : vector<4x8x1xf32>
    %c2_i32 = arith.constant 2 : i32
    %195 = vector.broadcast %c2_i32 : i32 to vector<4x8x1xi32>
    %196 = arith.cmpi eq, %15, %195 : vector<4x8x1xi32>
    %cst_52 = arith.constant 0.000000e+00 : f32
    %197 = vector.broadcast %cst_52 : f32 to vector<4x8x1xf32>
    %198 = arith.select %196, %165, %197 : vector<4x8x1xi1>, vector<4x8x1xf32>
    %199 = arith.addf %191, %198 : vector<4x8x1xf32>
    %200 = arith.subf %170, %173 : vector<4x8x1xf32>
    %201 = math.exp %200 : vector<4x8x1xf32>
    %202 = arith.addf %194, %201 : vector<4x8x1xf32>
    %c3_i32 = arith.constant 3 : i32
    %203 = vector.broadcast %c3_i32 : i32 to vector<4x8x1xi32>
    %204 = arith.cmpi eq, %15, %203 : vector<4x8x1xi32>
    %cst_53 = arith.constant 0.000000e+00 : f32
    %205 = vector.broadcast %cst_53 : f32 to vector<4x8x1xf32>
    %206 = arith.select %204, %170, %205 : vector<4x8x1xi1>, vector<4x8x1xf32>
    %207 = arith.addf %199, %206 : vector<4x8x1xf32>
    %208 = math.log %202 : vector<4x8x1xf32>
    %209 = arith.addf %173, %208 : vector<4x8x1xf32>
    %210 = arith.subf %209, %207 : vector<4x8x1xf32>
    %211 = arith.mulf %210, %68 : vector<4x8x1xf32>
    %cst_54 = arith.constant dense<0.000000e+00> : vector<4x1xf32>
    %212 = vector.multi_reduction <add>, %211, %cst_54 [1] : vector<4x8x1xf32> to vector<4x1xf32>
    %213 = vector.shape_cast %212 : vector<4x1xf32> to vector<4x1x1xf32>
    %214 = arith.divf %213, %72 : vector<4x1x1xf32>
    %215 = vector.broadcast %2 : vector<4x1x16xf32> to vector<4x8x16xf32>
    %216 = arith.mulf %64, %215 : vector<4x8x16xf32>
    %cst_55 = arith.constant dense<0.000000e+00> : vector<4x8xf32>
    %217 = vector.multi_reduction <add>, %216, %cst_55 [2] : vector<4x8x16xf32> to vector<4x8xf32>
    %218 = vector.shape_cast %217 : vector<4x8xf32> to vector<4x8x1xf32>
    %cst_56 = arith.constant 0.000000e+00 : f32
    %219 = vector.broadcast %cst_56 : f32 to vector<4x8x1xf32>
    %220 = arith.maximumf %218, %219 : vector<4x8x1xf32>
    %221 = arith.mulf %218, %16 : vector<4x8x1xf32>
    %222 = arith.subf %220, %221 : vector<4x8x1xf32>
    %223 = math.absf %218 : vector<4x8x1xf32>
    %cst_57 = arith.constant 0.000000e+00 : f32
    %224 = vector.broadcast %cst_57 : f32 to vector<4x8x1xf32>
    %225 = arith.subf %224, %223 : vector<4x8x1xf32>
    %226 = math.exp %225 : vector<4x8x1xf32>
    %cst_58 = arith.constant 1.000000e+00 : f32
    %227 = vector.broadcast %cst_58 : f32 to vector<4x8x1xf32>
    %228 = arith.addf %227, %226 : vector<4x8x1xf32>
    %229 = math.log %228 : vector<4x8x1xf32>
    %230 = arith.addf %222, %229 : vector<4x8x1xf32>
    %231 = arith.mulf %230, %68 : vector<4x8x1xf32>
    %cst_59 = arith.constant dense<0.000000e+00> : vector<4x1xf32>
    %232 = vector.multi_reduction <add>, %231, %cst_59 [1] : vector<4x8x1xf32> to vector<4x1xf32>
    %233 = vector.shape_cast %232 : vector<4x1xf32> to vector<4x1x1xf32>
    %234 = arith.divf %233, %72 : vector<4x1x1xf32>
    %235 = vector.broadcast %68 : vector<4x8x1xf32> to vector<4x8x16xf32>
    %236 = arith.mulf %64, %235 : vector<4x8x16xf32>
    %237 = tpu.iota {dimensions = array<i32: 1>} : vector<4x8x16xi32>
    %cst_60 = arith.constant 0.000000e+00 : f32
    %238 = vector.broadcast %cst_60 : f32 to vector<4x8x16xf32>
    %239 = arith.cmpf ogt, %236, %238 : vector<4x8x16xf32>
    %c-1_i32 = arith.constant -1 : i32
    %240 = vector.broadcast %c-1_i32 : i32 to vector<4x8x16xi32>
    %241 = arith.select %239, %237, %240 : vector<4x8x16xi1>, vector<4x8x16xi32>
    %cst_61 = arith.constant dense<-2147483648> : vector<4x16xi32>
    %242 = vector.multi_reduction <maxsi>, %241, %cst_61 [1] : vector<4x8x16xi32> to vector<4x16xi32>
    %243 = vector.shape_cast %242 : vector<4x16xi32> to vector<4x1x16xi32>
    %244 = vector.broadcast %243 : vector<4x1x16xi32> to vector<4x8x16xi32>
    %245 = arith.cmpi eq, %237, %244 : vector<4x8x16xi32>
    %cst_62 = arith.constant 0.000000e+00 : f32
    %246 = vector.broadcast %cst_62 : f32 to vector<4x8x16xf32>
    %247 = arith.cmpf ogt, %236, %246 : vector<4x8x16xf32>
    %248 = arith.andi %245, %247 : vector<4x8x16xi1>
    %cst_63 = arith.constant 0.000000e+00 : f32
    %249 = vector.shape_cast %53 : vector<4x8x1xf32> to vector<4x8x1xf32>
    %250 = vector.broadcast %249 : vector<4x8x1xf32> to vector<4x8x16xf32>
    %251 = vector.broadcast %cst_63 : f32 to vector<4x8x16xf32>
    %252 = arith.select %248, %250, %251 : vector<4x8x16xi1>, vector<4x8x16xf32>
    %cst_64 = arith.constant dense<0.000000e+00> : vector<4x16xf32>
    %253 = vector.multi_reduction <add>, %252, %cst_64 [1] : vector<4x8x16xf32> to vector<4x16xf32>
    %254 = vector.shape_cast %253 : vector<4x16xf32> to vector<4x1x16xf32>
    %cst_65 = arith.constant 0.000000e+00 : f32
    %255 = vector.broadcast %cst_65 : f32 to vector<4x1x16xf32>
    %256 = arith.maximumf %3, %255 : vector<4x1x16xf32>
    %257 = arith.mulf %3, %254 : vector<4x1x16xf32>
    %258 = arith.subf %256, %257 : vector<4x1x16xf32>
    %259 = math.absf %3 : vector<4x1x16xf32>
    %cst_66 = arith.constant 0.000000e+00 : f32
    %260 = vector.broadcast %cst_66 : f32 to vector<4x1x16xf32>
    %261 = arith.subf %260, %259 : vector<4x1x16xf32>
    %262 = math.exp %261 : vector<4x1x16xf32>
    %cst_67 = arith.constant 1.000000e+00 : f32
    %263 = vector.broadcast %cst_67 : f32 to vector<4x1x16xf32>
    %264 = arith.addf %263, %262 : vector<4x1x16xf32>
    %265 = math.log %264 : vector<4x1x16xf32>
    %266 = arith.addf %258, %265 : vector<4x1x16xf32>
    %cst_68 = arith.constant dense<0.000000e+00> : vector<4x1xf32>
    %267 = vector.multi_reduction <add>, %266, %cst_68 [2] : vector<4x1x16xf32> to vector<4x1xf32>
    %268 = vector.shape_cast %267 : vector<4x1xf32> to vector<4x1x1xf32>
    %cst_69 = arith.constant 6.250000e-02 : f32
    %269 = vector.broadcast %cst_69 : f32 to vector<4x1x1xf32>
    %270 = arith.mulf %268, %269 : vector<4x1x1xf32>
    %271 = vector.extract_strided_slice %5 {offsets = [0, 0, 0], sizes = [4, 1, 1], strides = [1, 1, 1]} : vector<4x1x4xf32> to vector<4x1x1xf32>
    %272 = arith.select %74, %150, %271 : vector<4x1x1xi1>, vector<4x1x1xf32>
    %273 = vector.extract_strided_slice %5 {offsets = [0, 0, 1], sizes = [4, 1, 1], strides = [1, 1, 1]} : vector<4x1x4xf32> to vector<4x1x1xf32>
    %274 = arith.select %74, %214, %273 : vector<4x1x1xi1>, vector<4x1x1xf32>
    %275 = vector.extract_strided_slice %5 {offsets = [0, 0, 2], sizes = [4, 1, 1], strides = [1, 1, 1]} : vector<4x1x4xf32> to vector<4x1x1xf32>
    %276 = arith.select %74, %234, %275 : vector<4x1x1xi1>, vector<4x1x1xf32>
    %277 = tpu.iota {dimensions = array<i32: 2>} : vector<1x1x128xi32>
    %c0_i32_70 = arith.constant 0 : i32
    %278 = vector.broadcast %c0_i32_70 : i32 to vector<1x1x128xi32>
    %279 = arith.cmpi eq, %277, %278 : vector<1x1x128xi32>
    %280 = vector.shape_cast %272 : vector<4x1x1xf32> to vector<1x4x1x1xf32>
    %cst_71 = arith.constant dense<0.000000e+00> : vector<1xf32>
    %281 = vector.multi_reduction <add>, %280, %cst_71 [1, 2, 3] : vector<1x4x1x1xf32> to vector<1xf32>
    %282 = vector.shape_cast %281 : vector<1xf32> to vector<1x1x1x1xf32>
    %283 = vector.extract %282[0, 0, 0, 0] : f32 from vector<1x1x1x1xf32>
    %cst_72 = arith.constant 0.000000e+00 : f32
    %284 = vector.broadcast %283 : f32 to vector<1x1x128xf32>
    %285 = vector.broadcast %cst_72 : f32 to vector<1x1x128xf32>
    %286 = arith.select %279, %284, %285 : vector<1x1x128xi1>, vector<1x1x128xf32>
    %c1_i32_73 = arith.constant 1 : i32
    %287 = vector.broadcast %c1_i32_73 : i32 to vector<1x1x128xi32>
    %288 = arith.cmpi eq, %277, %287 : vector<1x1x128xi32>
    %289 = vector.shape_cast %274 : vector<4x1x1xf32> to vector<1x4x1x1xf32>
    %cst_74 = arith.constant dense<0.000000e+00> : vector<1xf32>
    %290 = vector.multi_reduction <add>, %289, %cst_74 [1, 2, 3] : vector<1x4x1x1xf32> to vector<1xf32>
    %291 = vector.shape_cast %290 : vector<1xf32> to vector<1x1x1x1xf32>
    %292 = vector.extract %291[0, 0, 0, 0] : f32 from vector<1x1x1x1xf32>
    %cst_75 = arith.constant 0.000000e+00 : f32
    %293 = vector.broadcast %292 : f32 to vector<1x1x128xf32>
    %294 = vector.broadcast %cst_75 : f32 to vector<1x1x128xf32>
    %295 = arith.select %288, %293, %294 : vector<1x1x128xi1>, vector<1x1x128xf32>
    %296 = arith.addf %286, %295 : vector<1x1x128xf32>
    %c2_i32_76 = arith.constant 2 : i32
    %297 = vector.broadcast %c2_i32_76 : i32 to vector<1x1x128xi32>
    %298 = arith.cmpi eq, %277, %297 : vector<1x1x128xi32>
    %299 = vector.shape_cast %276 : vector<4x1x1xf32> to vector<1x4x1x1xf32>
    %cst_77 = arith.constant dense<0.000000e+00> : vector<1xf32>
    %300 = vector.multi_reduction <add>, %299, %cst_77 [1, 2, 3] : vector<1x4x1x1xf32> to vector<1xf32>
    %301 = vector.shape_cast %300 : vector<1xf32> to vector<1x1x1x1xf32>
    %302 = vector.extract %301[0, 0, 0, 0] : f32 from vector<1x1x1x1xf32>
    %cst_78 = arith.constant 0.000000e+00 : f32
    %303 = vector.broadcast %302 : f32 to vector<1x1x128xf32>
    %304 = vector.broadcast %cst_78 : f32 to vector<1x1x128xf32>
    %305 = arith.select %298, %303, %304 : vector<1x1x128xi1>, vector<1x1x128xf32>
    %306 = arith.addf %296, %305 : vector<1x1x128xf32>
    %c3_i32_79 = arith.constant 3 : i32
    %307 = vector.broadcast %c3_i32_79 : i32 to vector<1x1x128xi32>
    %308 = arith.cmpi eq, %277, %307 : vector<1x1x128xi32>
    %309 = vector.shape_cast %270 : vector<4x1x1xf32> to vector<1x4x1x1xf32>
    %cst_80 = arith.constant dense<0.000000e+00> : vector<1xf32>
    %310 = vector.multi_reduction <add>, %309, %cst_80 [1, 2, 3] : vector<1x4x1x1xf32> to vector<1xf32>
    %311 = vector.shape_cast %310 : vector<1xf32> to vector<1x1x1x1xf32>
    %312 = vector.extract %311[0, 0, 0, 0] : f32 from vector<1x1x1x1xf32>
    %cst_81 = arith.constant 0.000000e+00 : f32
    %313 = vector.broadcast %312 : f32 to vector<1x1x128xf32>
    %314 = vector.broadcast %cst_81 : f32 to vector<1x1x128xf32>
    %315 = arith.select %308, %313, %314 : vector<1x1x128xi1>, vector<1x1x128xf32>
    %316 = arith.addf %306, %315 : vector<1x1x128xf32>
    %c0_82 = arith.constant 0 : index
    %c0_83 = arith.constant 0 : index
    %c0_84 = arith.constant 0 : index
    %317 = vector.load %arg7[%c0_82, %c0_83, %c0_84] : memref<1x1x128xf32, #tpu.memory_space<vmem>>, vector<1x1x128xf32>
    tpu.vector_store %arg7[%c0_82, %c0_83, %c0_84], %316 {strides = array<i32>} : memref<1x1x128xf32, #tpu.memory_space<vmem>>, vector<1x1x128xf32>,
    return
  }
  func.func @transform_0(%arg0: i32) -> (i32, i32, i32) {
    %c0_i32 = arith.constant 0 : i32
    %c0_i32_0 = arith.constant 0 : i32
    %c0_i32_1 = arith.constant 0 : i32
    return %arg0, %c0_i32, %c0_i32_0 : i32, i32, i32
  }
  func.func @transform_1(%arg0: i32) -> (i32, i32, i32) {
    %c0_i32 = arith.constant 0 : i32
    %c0_i32_0 = arith.constant 0 : i32
    %c0_i32_1 = arith.constant 0 : i32
    return %arg0, %c0_i32, %c0_i32_0 : i32, i32, i32
  }
  func.func @transform_2(%arg0: i32) -> (i32, i32, i32) {
    %c0_i32 = arith.constant 0 : i32
    %c0_i32_0 = arith.constant 0 : i32
    %c0_i32_1 = arith.constant 0 : i32
    return %arg0, %c0_i32, %c0_i32_0 : i32, i32, i32
  }
  func.func @transform_3(%arg0: i32) -> (i32, i32, i32) {
    %c0_i32 = arith.constant 0 : i32
    %c0_i32_0 = arith.constant 0 : i32
    %c0_i32_1 = arith.constant 0 : i32
    return %arg0, %c0_i32, %c0_i32_0 : i32, i32, i32
  }
  func.func @transform_4(%arg0: i32) -> (i32, i32, i32) {
    %c0_i32 = arith.constant 0 : i32
    %c0_i32_0 = arith.constant 0 : i32
    %c0_i32_1 = arith.constant 0 : i32
    return %arg0, %c0_i32, %c0_i32_0 : i32, i32, i32
  }
  func.func @transform_5(%arg0: i32) -> (i32, i32, i32) {
    %c0_i32 = arith.constant 0 : i32
    %c0_i32_0 = arith.constant 0 : i32
    %c0_i32_1 = arith.constant 0 : i32
    return %arg0, %c0_i32, %c0_i32_0 : i32, i32, i32
  }
  func.func @transform_6(%arg0: i32) -> (i32, i32, i32) {
    %c0_i32 = arith.constant 0 : i32
    %c0_i32_0 = arith.constant 0 : i32
    %c0_i32_1 = arith.constant 0 : i32
    return %arg0, %c0_i32, %c0_i32_0 : i32, i32, i32
  }
}

</mosaic_0001>

<bundles_post_ra>
// kernel: detection_loss.1
= control target key start
LH: loop header
LB: loop body
LE: loop exit
PB: predicated region body
PF: predicated region fallthrough
CT: control target
= control target key end

     0   :  { %s2203_s21 = smov 0   ;;  %s3015_s0 = inlined_call_operand.vmem [shape: f32[8,4,16], index: 0, kind: input, shape index: {}]   ;;  %s3016_s1 = inlined_call_operand.vmem [shape: f32[8,4,16], index: 1, kind: input, shape index: {}]   ;;  %s3017_s2 = inlined_call_operand.vmem [shape: f32[8,1,16], index: 2, kind: input, shape index: {}]   ;;  %s3018_s3 = inlined_call_operand.vmem [shape: f32[8,1,16], index: 3, kind: input, shape index: {}]   ;;  %s3019_s4 = inlined_call_operand.vmem [shape: f32[8,8,6], index: 4, kind: input, shape index: {}]   ;;  %s3020_s5 = inlined_call_operand.vmem [shape: f32[8,1,4], index: 5, kind: input, shape index: {}]   ;;  %s3021_s6 = inlined_call_operand.vmem [shape: f32[2,1,128], index: 6, kind: output, shape index: {}]  }
   0x1 LB: > { %s2209_s22 = sadd.s32 4294967295, %s2154_s21   ;;  %p1951_p0 = scmp.ge.s32.totalorder %s2154_s21, 1  ;;  %s2154_s21 = sphi %s2203_s21, %s16_s21  }
   0x2   : > { %p265_p1 = scmp.lt.s32.totalorder %s2154_s21, 3 }
   0x4   : > { %p266_p2 = pnand %p1951_p0, %p265_p1 }
   0x6   : > { %269 = sbr.rel (%p266_p2) target bundleno = 1485 (0x5cd), region = 44 }
   0xd   : > { %s1952_s23 = sshll.u32 %s2209_s22, 2  ;;  %v2156_v0 = vmov 2   ;;  %s2157_s28 = smov 2   ;;  %v2158_v5 = vmov 0   ;;  %v2160_v14 = vmov 1   ;;  %v2161_v15 = vmov 3  }
   0xe   : > { %p316_p3 = scmp.lt.s32.totalorder %s1952_s23, 7  ;;  %2027 = vset.pattern.permute.xlu1 %v2156_v0  ;;  %2029 = vset.pattern.permute.xlu0 %v2158_v5  ;;  %s2159_s29 = smov 127   ;;  %v451_v31 = vlaneseq  ;;  %vm679_vm0 = vcmask 130048  }
   0xf   : > { %s2162_s13 = smov 3   ;;  %s2165_s26 = smov 125  }
  0x10   : > { %s3031_s23 = smov (!%p316_p3, %s1952_s23), 7  ;;  %v2248_v34 = vshrl.u32 %v451_v31, 7  ;;  %p348_p4 = scmp.lt.s32.totalorder %s2209_s22, 1 }
  0x11   : > { %s1959_s24 = sshll.u32 %s3031_s23, 3  ;;  %s1953_s30 = sshll.u32 %s3031_s23, 2 }
  0x12   : > { %s2220_s27 = scalar_lea.vmem %s3019_s4, %s1959_s24  ;;  %s319_s9 = scalar_lea.vmem %s3015_s0, %s1953_s30  ;;  %v2258_v38 = vsub.s32 2, %v2248_v34  ;;  %v2263_v41 = vsub.s32 0, %v2248_v34  ;;  %v2266_v46 = vsub.s32 3, %v2248_v34  ;;  %v2269_v47 = vsub.s32 1, %v2248_v34 }
  0x13   : > { %v367_v1 = vld [vmem:[%s2220_s27] sm:$0xff]  ;;  %v369_v2 = vld [vmem:[%s2220_s27 + $0x10] sm:$0xff]  ;;  %v368_v3 = vld [vmem:[%s2220_s27 + $0x8] sm:$0xff]  ;;  %s2380_s12 = scalar_lea.vmem %s3020_s5, %s3031_s23  ;;  %s2393_s16 = scalar_lea.vmem %s3016_s1, %s1953_s30 }
  0x14   : > { %415 = vrot.lane.b32.xlu0 %v367_v1, %s2157_s28  ;;  %419 = vrot.lane.b32.xlu1 %v369_v2, %s2157_s28  ;;  %v370_v4 = vld [vmem:[%s2220_s27 + $0x18] sm:$0xff]  ;;  %v351_v35 = vld [vmem:[%s319_s9] sm:$0xf]  ;;  %s335_s19 = scalar_lea.vmem %s3018_s3, %s3031_s23  ;;  %s2542_s25 = scalar_lea.vmem %s3017_s2, %s3031_s23 }
  0x15   : > { %v383_v37 = vrot.slane %v351_v35, 6  ;;  %v352_v40 = vld [vmem:[%s319_s9 + $0x4] sm:$0xf]  ;;  %v353_v42 = vld [vmem:[%s319_s9 + $0x8] sm:$0xf]  ;;  %v2275_v49 = vrot.slane %v351_v35, %v2263_v41  ;;  %v2281_v52 = vrot.slane %v351_v35, %v2266_v46  ;;  %v2284_v53 = vrot.slane %v351_v35, %v2269_v47  ;;  %s2164_s23 = smov 126  }
  0x16   : > { %v384_v44 = vrot.slane %v352_v40, 6  ;;  %v385_v45 = vrot.slane %v353_v42, 6  ;;  %v2272_v48 = vrot.slane %v352_v40, %v2258_v38  ;;  %v2278_v51 = vrot.slane %v352_v40, %v2263_v41  ;;  %v354_v54 = vld [vmem:[%s319_s9 + $0xc] sm:$0xf]  ;;  %s3033_s22 = smov (!%p348_p4, %s2209_s22), 1 }
  0x17   : > { %v391_v43 = vsub.f32 %v351_v35, %v383_v37  ;;  %v2287_v55 = vrot.slane %v351_v35, %v2258_v38  ;;  %v386_v60 = vrot.slane %v354_v54, 6  ;;  %v2290_v61 = vrot.slane %v353_v42, %v2263_v41  ;;  %s350_s11 = scalar_lea.vmem %s3021_s6, %s3033_s22 }
  0x18   : > { %417 = vrot.lane.b32.xlu0 %v368_v3, %s2157_s28  ;;  %421 = vrot.lane.b32.xlu1 %v370_v4, %s2157_s28  ;;  %v392_v58 = vsub.f32 %v352_v40, %v384_v44  ;;  %v393_v59 = vsub.f32 %v353_v42, %v385_v45  ;;  %v2293_v62 = vrot.slane %v352_v40, %v2266_v46  ;;  %s2167_s28 = smov 124  }
  0x19   : > { %v399_v57 = vrot.slane %v391_v43, 1  ;;  %v2296_v63 = vrot.slane %v352_v40, %v2269_v47 }
  0x86   : > { %v416_v6 = vpop.permute.xlu0 %415  ;;  %v420_v7 = vpop.permute.xlu1 %419 }
  0x87   : > { %v427_v8 = vsub.f32 %v367_v1, %v416_v6  ;;  %v429_v9 = vsub.f32 %v369_v2, %v420_v7 }
  0x89   : > { %435 = vrot.lane.b32.xlu0 %v427_v8, %s2159_s29 }
  0x8a   : > { %v418_v10 = vpop.permute.xlu0 %417  ;;  %v422_v11 = vpop.permute.xlu1 %421 }
  0x8b   : > { %v428_v12 = vsub.f32 %v368_v3, %v418_v10  ;;  %v430_v13 = vsub.f32 %v370_v4, %v422_v11  ;;  %v407_v10 = vmul.f32 %v399_v57, %v391_v43  ;;  %v400_v11 = vrot.slane %v392_v58, 1 }
  0x8d   : > { %439 = vrot.lane.b32.xlu0 %v429_v9, %s2159_s29  ;;  %437 = vrot.lane.b32.xlu1 %v428_v12, %s2159_s29 }
  0x91   : > { %441 = vrot.lane.b32.xlu1 %v430_v13, %s2159_s29  ;;  %508 = vperm.xlu0 %2029, %v368_v3  }
  0x95   : > { %472 = vperm.xlu1 %2027, %v368_v3   ;;  %512 = vperm.xlu0 %2029, %v369_v2  }
  0x99   : > { %2028 = vset.pattern.permute.xlu1 %v2158_v5  ;;  %2033 = vset.pattern.permute.xlu0 %v2160_v14 }
  0x9a   : > { %504 = vperm.xlu1 %2028, %v367_v1   ;;  %584 = vperm.xlu0 %2033, %v367_v1  }
  0x9e   : > { %2030 = vset.pattern.permute.xlu1 %v2161_v15  ;;  %596 = vperm.xlu0 %2033, %v370_v4  }
  0x9f   : > { %548 = vperm.xlu1 %2030, %v367_v1  }
  0xa2   : > { %2038 = vset.pattern.permute.xlu0 %v2156_v0 }
  0xa3   : > { %552 = vperm.xlu1 %2030, %v368_v3   ;;  %468 = vperm.xlu0 %2038, %v367_v1   ;;  %v2302_v1 = vrot.slane %v353_v42, %v2266_v46 }
  0xa7   : > { %2031 = vset.pattern.permute.xlu1 %v2160_v14  ;;  %480 = vperm.xlu0 %2038, %v370_v4  }
  0xa8   : > { %588 = vperm.xlu1 %2031, %v368_v3  }
  0xac   : > { %2032 = vset.pattern.permute.xlu1 %v2156_v0 }
  0xad   : > { %476 = vperm.xlu1 %2032, %v369_v2  }
  0xb1   : > { %2034 = vset.pattern.permute.xlu1 %v2161_v15 }
  0xb2   : > { %556 = vperm.xlu1 %2034, %v369_v2  }
  0xb6   : > { %2035 = vset.pattern.permute.xlu1 %v2160_v14 }
  0xb7   : > { %592 = vperm.xlu1 %2035, %v369_v2   ;;  %v2305_v2 = vrot.slane %v353_v42, %v2269_v47 }
  0xbb   : > { %2036 = vset.pattern.permute.xlu1 %v2158_v5  ;;  %v2311_v5 = vrot.slane %v354_v54, %v2258_v38 }
  0xbc   : > { %516 = vperm.xlu1 %2036, %v370_v4  }
  0xc0   : > { %2037 = vset.pattern.permute.xlu1 %v2161_v15 }
  0xc1   : > { %560 = vperm.xlu1 %2037, %v370_v4   ;;  %v2308_v4 = vrot.slane %v354_v54, %v2263_v41 }
  0xc5   : > { %2039 = vset.pattern.permute.xlu1 %v2156_v0  ;;  %v2299_v0 = vrot.slane %v353_v42, %v2258_v38 }
  0xfb   : > { %v436_v16 = vpop.permute.xlu0 %435 }
  0xfc   : > { %v447_v17 = vmul.f32 %v436_v16, %v427_v8 }
  0xfe   : > { %633 = vperm.xlu1 %2039, %v447_v17  }
  0xff   : > { %v438_v18 = vpop.permute.xlu1 %437  ;;  %v440_v19 = vpop.permute.xlu0 %439 }
 0x100   : > { %v448_v20 = vmul.f32 %v438_v18, %v428_v12  ;;  %v449_v21 = vmul.f32 %v440_v19, %v429_v9  ;;  %v401_v12 = vrot.slane %v393_v59, 1 }
 0x102   : > { %638 = vperm.xlu1 %2039, %v448_v20   ;;  %643 = vperm.xlu0 %2038, %v449_v21  }
 0x103   : > { %v442_v22 = vpop.permute.xlu1 %441 }
 0x104   : > { %v450_v23 = vmul.f32 %v442_v22, %v430_v13  ;;  %v394_v13 = vsub.f32 %v354_v54, %v386_v60 }
 0x106   : > { %648 = vperm.xlu1 %2039, %v450_v23   ;;  %v402_v35 = vrot.slane %v394_v13, 1 }
 0x108   : > { %v410_v57 = vmul.f32 %v402_v35, %v394_v13 }
 0x110   : > { %v2236_v27 = vpop.permute.xlu0 %508 }
 0x111   : > { %v520_v15 = vmax.f32 %v2278_v51, %v2236_v27 }
 0x114   : > { %v2230_v24 = vpop.permute.xlu1 %472  ;;  %v2240_v29 = vpop.permute.xlu0 %512 }
 0x115   : > { %v484_v14 = vmin.f32 %v2272_v48, %v2230_v24  ;;  %v521_v16 = vmax.f32 %v2290_v61, %v2240_v29  ;;  %v2335_v24 = vrot.slane %v354_v54, %v2269_v47  ;;  %v408_v29 = vmul.f32 %v400_v11, %v392_v58 }
 0x119   : > { %v2232_v25 = vpop.permute.xlu1 %504  ;;  %v585_v33 = vpop.permute.xlu0 %584 }
 0x11a   : > { %v519_v6 = vmax.f32 %v2275_v49, %v2232_v25  ;;  %v599_v8 = vmax.f32 %v2284_v53, %v585_v33  ;;  %v409_v33 = vmul.f32 %v401_v12, %v393_v59 }
 0x11d   : > { %v2260_v39 = vpop.permute.xlu0 %596 }
 0x11e   : > { %v2234_v26 = vpop.permute.xlu1 %548  ;;  %v602_v44 = vmax.f32 %v2335_v24, %v2260_v39 }
 0x11f   : > { %v563_v7 = vmin.f32 %v2281_v52, %v2234_v26  ;;  %v2338_v26 = vrot.slane %v354_v54, %v2266_v46 }
 0x121   : > { %v603_v23 = vsub.f32 %v563_v7, %v599_v8 }
 0x122   : > { %v2238_v28 = vpop.permute.xlu1 %552  ;;  %v469_v56 = vpop.permute.xlu0 %468 }
 0x123   : > { %v483_v9 = vmin.f32 %v2287_v55, %v469_v56  ;;  %v564_v17 = vmin.f32 %v2293_v62, %v2238_v28  ;;  %v618_v28 = vrot.slane %v407_v10, %v2258_v38  ;;  %v607_v43 = vmax.f32 %v603_v23, 0.0 }
 0x124   : > { %v622_v56 = vrot.slane %v408_v29, %v2258_v38 }
 0x125   : > { %v523_v25 = vsub.f32 %v483_v9, %v519_v6 }
 0x126   : > { %v481_v22 = vpop.permute.xlu0 %480 }
 0x127   : > { %v2242_v30 = vpop.permute.xlu1 %588  ;;  %v527_v45 = vmax.f32 %v523_v25, 0.0 }
 0x128   : > { %v600_v18 = vmax.f32 %v2296_v63, %v2242_v30  ;;  %v524_v30 = vsub.f32 %v484_v14, %v520_v15 }
 0x129   : > { %v611_v9 = vmul.f32 %v607_v43, %v527_v45 }
 0x12a   : > { %v528_v54 = vmax.f32 %v524_v30, 0.0 }
 0x12c   : > { %v2244_v32 = vpop.permute.xlu1 %476 }
 0x12d   : > { %v485_v19 = vmin.f32 %v2299_v0, %v2244_v32  ;;  %v486_v32 = vmin.f32 %v2311_v5, %v481_v22 }
 0x12f   : > { %v525_v37 = vsub.f32 %v485_v19, %v521_v16 }
 0x131   : > { %v2255_v36 = vpop.permute.xlu1 %556  ;;  %v529_v60 = vmax.f32 %v525_v37, 0.0 }
 0x132   : > { %v565_v20 = vmin.f32 %v2302_v1, %v2255_v36  ;;  %v604_v36 = vsub.f32 %v564_v17, %v600_v18  ;;  %v630_v17 = vrot.slane %v410_v57, %v2258_v38 }
 0x134   : > { %v608_v58 = vmax.f32 %v604_v36, 0.0 }
 0x136   : > { %v593_v50 = vpop.permute.xlu1 %592  ;;  %v612_v14 = vmul.f32 %v608_v58, %v528_v54 }
 0x137   : > { %v601_v21 = vmax.f32 %v2305_v2, %v593_v50 }
 0x139   : > { %v605_v40 = vsub.f32 %v565_v20, %v601_v21 }
 0x13b   : > { %v517_v3 = vpop.permute.xlu1 %516  ;;  %v609_v59 = vmax.f32 %v605_v40, 0.0 }
 0x13c   : > { %v522_v42 = vmax.f32 %v2308_v4, %v517_v3  ;;  %v626_v3 = vrot.slane %v409_v33, %v2258_v38 }
 0x13d   : > { %v613_v16 = vmul.f32 %v609_v59, %v529_v60 }
 0x13e   : > { %v526_v6 = vsub.f32 %v486_v32, %v522_v42 }
 0x140   : > { %v561_v27 = vpop.permute.xlu1 %560  ;;  %v530_v12 = vmax.f32 %v526_v6, 0.0 }
 0x141   : > { %v566_v50 = vmin.f32 %v2338_v26, %v561_v27 }
 0x143   : > { %v606_v8 = vsub.f32 %v566_v50, %v602_v44 }
 0x145   : > { %v610_v18 = vmax.f32 %v606_v8, 0.0 }
 0x147   : > { %v614_v23 = vmul.f32 %v610_v18, %v530_v12 }
 0x17d   : > { %v634_v7 = vpop.permute.xlu1 %633 }
 0x17e   : > { %v651_v10 = vadd.f32 %v634_v7, %v618_v28 }
 0x180   : > { %v655_v11 = vsub.f32 %v651_v10, %v611_v9  ;;  %v2354_v10 = vand.u32 127, %v451_v31 }
 0x181   : > { %v639_v39 = vpop.permute.xlu1 %638  ;;  %v644_v15 = vpop.permute.xlu0 %643 }
 0x182   : > { %2040 = vrcp.f32 %v655_v11  ;;  %v652_v13 = vadd.f32 %v639_v39, %v622_v56  ;;  %v653_v19 = vadd.f32 %v644_v15, %v626_v3  ;;  %3024 = vst [vmem:[#allocation2_spill] sm:$0xff] %v2354_v10 }
 0x184   : > { %v656_v20 = vsub.f32 %v652_v13, %v612_v14  ;;  %v657_v21 = vsub.f32 %v653_v19, %v613_v16 }
 0x185   : > { %v649_v22 = vpop.permute.xlu1 %648 }
 0x186   : > { %2042 = vrcp.f32 %v656_v20  ;;  %v654_v25 = vadd.f32 %v649_v22, %v630_v17 }
 0x187   : > { %2044 = vrcp.f32 %v657_v21 }
 0x188   : > { %v658_v27 = vsub.f32 %v654_v25, %v614_v23 }
 0x18a   : > { %2046 = vrcp.f32 %v658_v27 }
 0x18c   : > { %v2041_v28 = vpop.eup %2040 }
 0x18d   : > { %v663_v29 = vmul.f32 %v2041_v28, %v655_v11 }
 0x18f   : > { %v667_v30 = vsub.f32 2.0, %v663_v29 }
 0x190   : > { %v2043_v32 = vpop.eup %2042 }
 0x191   : > { %v2045_v33 = vpop.eup %2044  ;;  %v664_v35 = vmul.f32 %v2043_v32, %v656_v20  ;;  %v671_v36 = vmul.f32 %v2041_v28, %v667_v30  ;;  %v2144_v30 = vld [vmem:[%s2380_s12 + $0x1] ss:$0 sm:$0xff] }
 0x192   : > { %v665_v37 = vmul.f32 %v2045_v33, %v657_v21 }
 0x193   : > { %v668_v40 = vsub.f32 2.0, %v664_v35  ;;  %v675_v42 = vmul.f32 %v671_v36, %v611_v9 }
 0x194   : > { %v2047_v43 = vpop.eup %2046  ;;  %v669_v44 = vsub.f32 2.0, %v665_v37 }
 0x195   : > { %v666_v45 = vmul.f32 %v2047_v43, %v658_v27  ;;  %v680_v50 = vsel %vm679_vm0, %v675_v42, -inf  ;;  %v672_v54 = vmul.f32 %v2043_v32, %v668_v40  ;;  %v2145_v32 = vld [vmem:[%s2380_s12] ss:$0 sm:$0xff] }
 0x196   : > { %681 = vmax.xlane.f32.xlu1 %v680_v50  ;;  %v673_v56 = vmul.f32 %v2045_v33, %v669_v44 }
 0x197   : > { %v670_v57 = vsub.f32 2.0, %v666_v45  ;;  %v676_v58 = vmul.f32 %v672_v54, %v612_v14 }
 0x198   : > { %v677_v59 = vmul.f32 %v673_v56, %v613_v16 }
 0x199   : > { %v683_v60 = vsel %vm679_vm0, %v676_v58, -inf  ;;  %v674_v6 = vmul.f32 %v2047_v43, %v670_v57 }
 0x19a   : > { %684 = vmax.xlane.f32.xlu0 %v683_v60  ;;  %v686_v8 = vsel %vm679_vm0, %v677_v59, -inf }
 0x19b   : > { %v678_v7 = vmul.f32 %v674_v6, %v614_v23  ;;  %v2146_v6 = vld [vmem:[%s2380_s12 + $0x2] ss:$0 sm:$0xff] }
 0x19d   : > { %v689_v9 = vsel %vm679_vm0, %v678_v7, -inf }
 0x19e   : > { %687 = vmax.xlane.f32.xlu0 %v686_v8  ;;  %690 = vmax.xlane.f32.xlu1 %v689_v9 }
 0x223   : > { %v2356_v3 = vpop.xlane.xlu1 %681 }
 0x224   : > { %vm694_vm1 = vcmp.ge.f32.partialorder %v675_v42, %v2356_v3  ;;  %vm774_vm13 = vcmp.gt.f32.partialorder %v2356_v3, 0.5 }
 0x225   : > { %v698_v11 = vsel %vm694_vm1, %v2354_v10, 16 }
 0x226   : > { %v702_v12 = vsel %vm679_vm0, %v698_v11, 2147483647 }
 0x227   : > { %v2361_v39 = vpop.xlane.xlu0 %684  ;;  %v704_v14 = vshra.s32 %v702_v12, 16  ;;  %v703_v33 = vand.u32 65535, %v702_v12 }
 0x228   : > { %vm695_vm2 = vcmp.ge.f32.partialorder %v676_v58, %v2361_v39  ;;  %vm775_vm14 = vcmp.gt.f32.partialorder %v2361_v39, 0.5 }
 0x229   : > { %v706_v15 = vcvt.s32.f32 %v704_v14  ;;  %v699_v16 = vsel %vm695_vm2, %v2354_v10, 16  ;;  %v705_v36 = vcvt.s32.f32 %v703_v33  ;;  %v2398_v14 = vld [vmem:[%s2393_s16] sm:$0xf] }
 0x22a   : > { %v717_v17 = vsel %vm679_vm0, %v699_v16, 2147483647 }
 0x22b   : > { %v2366_v31 = vpop.xlane.xlu0 %687  ;;  %707 = vmin.xlane.f32.xlu0 %v706_v15  ;;  %v2368_v18 = vpop.xlane.xlu1 %690  ;;  %v719_v13 = vshra.s32 %v717_v17, 16  ;;  %v718_v37 = vand.u32 65535, %v717_v17 }
 0x22c   : > { %vm696_vm3 = vcmp.ge.f32.partialorder %v677_v59, %v2366_v31  ;;  %vm697_vm4 = vcmp.ge.f32.partialorder %v678_v7, %v2368_v18  ;;  %v2147_v7 = vld [vmem:[%s2380_s12 + $0x3] ss:$0 sm:$0xff]  ;;  %vm776_vm15 = vcmp.gt.f32.partialorder %v2366_v31, 0.5  ;;  %vm777_vm1 = vcmp.gt.f32.partialorder %v2368_v18, 0.5 }
 0x22d   : > { %v721_v19 = vcvt.s32.f32 %v719_v13  ;;  %v700_v20 = vsel %vm696_vm3, %v2354_v10, 16  ;;  %v701_v22 = vsel %vm697_vm4, %v2354_v10, 16  ;;  %v720_v43 = vcvt.s32.f32 %v718_v37 }
 0x22e   : > { %v732_v21 = vsel %vm679_vm0, %v700_v20, 2147483647  ;;  %v747_v25 = vsel %vm679_vm0, %v701_v22, 2147483647  ;;  %v2403_v22 = vld [vmem:[%s2393_s16 + $0x4] sm:$0xf] }
 0x22f   : > { %722 = vmin.xlane.f32.xlu1 %v721_v19  ;;  %v734_v23 = vshra.s32 %v732_v21, 16  ;;  %v749_v27 = vshra.s32 %v747_v25, 16  ;;  %v733_v44 = vand.u32 65535, %v732_v21  ;;  %v748_v45 = vand.u32 65535, %v747_v25 }
 0x231   : > { %v736_v28 = vcvt.s32.f32 %v734_v23  ;;  %v751_v29 = vcvt.s32.f32 %v749_v27  ;;  %v735_v56 = vcvt.s32.f32 %v733_v44  ;;  %v750_v58 = vcvt.s32.f32 %v748_v45 }
 0x232   : > { %v1142_v27 = vrot.slane %v2398_v14, %v2269_v47 }
 0x233   : > { %737 = vmin.xlane.f32.xlu0 %v736_v28  ;;  %752 = vmin.xlane.f32.xlu1 %v751_v29 }
 0x244   : > { %1718 = vrot.lane.b32.xlu1 %v2144_v30, %s2162_s13 }
 0x249   : > { %1716 = vrot.lane.b32.xlu0 %v2145_v32, %s2162_s13 }
 0x2b8   : > { %v708_v35 = vpop.xlane.xlu0 %707 }
 0x2b9   : > { %vm709_vm5 = vcmp.eq.f32.partialorder %v706_v15, %v708_v35  ;;  %v714_v9 = vcvt.f32.s32 %v708_v35  ;;  %v1114_v35 = vrot.slane %v2403_v22, %v2263_v41 }
 0x2ba   : > { %v710_v40 = vsel %vm709_vm5, %v705_v36, inf }
 0x2bb   : > { %711 = vmin.xlane.f32.xlu0 %v710_v40  ;;  %v715_v15 = vshll.u32 %v714_v9, 16  ;;  %v2415_v40 = vld [vmem:[%s2393_s16 + $0x8] sm:$0xf] }
 0x2bc   : > { %v723_v42 = vpop.xlane.xlu1 %722  ;;  %v1150_v9 = vrot.slane %v2415_v40, %v2269_v47 }
 0x2bd   : > { %vm724_vm6 = vcmp.eq.f32.partialorder %v721_v19, %v723_v42  ;;  %v729_v16 = vcvt.f32.s32 %v723_v42  ;;  %v1110_v19 = vrot.slane %v2398_v14, %v2263_v41  ;;  %v1146_v42 = vrot.slane %v2403_v22, %v2269_v47 }
 0x2be   : > { %v725_v50 = vsel %vm724_vm6, %v720_v43, inf }
 0x2bf   : > { %726 = vmin.xlane.f32.xlu1 %v725_v50  ;;  %v730_v23 = vshll.u32 %v729_v16, 16 }
 0x2c0   : > { %v738_v54 = vpop.xlane.xlu0 %737  ;;  %v753_v57 = vpop.xlane.xlu1 %752 }
 0x2c1   : > { %vm739_vm7 = vcmp.eq.f32.partialorder %v736_v28, %v738_v54  ;;  %vm754_vm8 = vcmp.eq.f32.partialorder %v751_v29, %v753_v57  ;;  %v744_v20 = vcvt.f32.s32 %v738_v54  ;;  %v759_v28 = vcvt.f32.s32 %v753_v57 }
 0x2c2   : > { %v740_v60 = vsel %vm739_vm7, %v735_v56, inf  ;;  %v755_v59 = vsel %vm754_vm8, %v750_v58, inf  ;;  %v2163_v29 = vmov 0.0  }
 0x2c3   : > { %741 = vmin.xlane.f32.xlu0 %v740_v60  ;;  %756 = vmin.xlane.f32.xlu1 %v755_v59  ;;  %v745_v36 = vshll.u32 %v744_v20, 16  ;;  %v760_v54 = vshll.u32 %v759_v28, 16  ;;  %v1118_v59 = vrot.slane %v2415_v40, %v2263_v41  ;;  %v2448_v20 = vld [vmem:[%s335_s19] sm:$0x1] }
 0x2c4   : > { %v2386_v8 = vpop.permute.xlu0 %1716  ;;  %v2395_v11 = vpop.permute.xlu1 %1718 }
 0x2d4   : > { %1720 = vrot.lane.b32.xlu1 %v2146_v6, %s2162_s13 }
 0x2d9   : > { %1722 = vrot.lane.b32.xlu0 %v2147_v7, %s2162_s13  ;;  %v1174_v7 = vrot.slane %v2398_v14, %v2258_v38 }
 0x348   : > { %v712_v12 = vpop.xlane.xlu0 %711 }
 0x349   : > { %v713_v17 = vcvt.f32.s32 %v712_v12 }
 0x34b   : > { %v716_v13 = vadd.s32 %v715_v15, %v713_v17  ;;  %v2441_v17 = vld [vmem:[%s2393_s16 + $0xc] sm:$0xf] }
 0x34c   : > { %v727_v21 = vpop.xlane.xlu1 %726 }
 0x34d   : > { %vm762_vm9 = vcmp.eq.s32.totalorder %v2354_v10, %v716_v13  ;;  %v728_v25 = vcvt.f32.s32 %v727_v21  ;;  %v1178_v21 = vrot.slane %v2403_v22, %v2258_v38 }
 0x34e   : > { %v2409_v30 = vsel %vm762_vm9, 1.0, %v2163_v29 }
 0x34f   : > { %v731_v32 = vadd.s32 %v730_v23, %v728_v25  ;;  %v1123_v33 = vmul.f32 %v2409_v30, %v1110_v19  ;;  %v1155_v50 = vmul.f32 %v2409_v30, %v1142_v27  ;;  %v1122_v23 = vrot.slane %v2441_v17, %v2263_v41  ;;  %v2454_v25 = vld [vmem:[%s335_s19 + $0x1] sm:$0x1]  ;;  %v2456_v27 = vld [vmem:[%s335_s19 + $0x2] sm:$0x1] }
 0x350   : > { %v742_v37 = vpop.xlane.xlu0 %741  ;;  %v757_v44 = vpop.xlane.xlu1 %756  ;;  %v1643_v41 = vand.u32 2147483647, %v2448_v20 }
 0x351   : > { %vm763_vm10 = vcmp.eq.s32.totalorder %v2354_v10, %v731_v32  ;;  %v743_v43 = vcvt.f32.s32 %v742_v37  ;;  %v1127_v45 = vsel %vm679_vm0, %v1123_v33, 0.0  ;;  %v758_v57 = vcvt.f32.s32 %v757_v44 }
 0x352   : > { %v2423_v56 = vsel %vm763_vm10, 1.0, %v2163_v29  ;;  %1128 = vadd.xlane.f32.xlu0 %v1127_v45  ;;  %v1159_v12 = vsel %vm679_vm0, %v1155_v50, 0.0  ;;  %v1187_v33 = vmul.f32 %v2409_v30, %v1174_v7  ;;  %v1644_v37 = vand.u32 2147483647, %v2454_v25 }
 0x353   : > { %v746_v58 = vadd.s32 %v745_v36, %v743_v43  ;;  %v1124_v60 = vmul.f32 %v2423_v56, %v1114_v35  ;;  %v761_v6 = vadd.s32 %v760_v54, %v758_v57  ;;  %v1156_v16 = vmul.f32 %v2423_v56, %v1146_v42  ;;  %v2470_v43 = vld [vmem:[%s335_s19 + $0x3] sm:$0x1] }
 0x354   : > { %v1645_v42 = vand.u32 2147483647, %v2456_v27  ;;  %v1154_v44 = vrot.slane %v2441_v17, %v2269_v47  ;;  %v1182_v45 = vrot.slane %v2415_v40, %v2258_v38  ;;  %v1191_v50 = vsel %vm679_vm0, %v1187_v33, 0.0 }
 0x355   : > { %vm764_vm11 = vcmp.eq.s32.totalorder %v2354_v10, %v746_v58  ;;  %v1130_v15 = vsel %vm679_vm0, %v1124_v60, 0.0  ;;  %vm765_vm12 = vcmp.eq.s32.totalorder %v2354_v10, %v761_v6  ;;  %v1162_v32 = vsel %vm679_vm0, %v1156_v16, 0.0 }
 0x356   : > { %v2444_v13 = vsel %vm764_vm11, 1.0, %v2163_v29  ;;  %1160 = vadd.xlane.f32.xlu0 %v1159_v12  ;;  %1131 = vadd.xlane.f32.xlu1 %v1130_v15  ;;  %v2465_v36 = vsel %vm765_vm12, 1.0, %v2163_v29  ;;  %v1188_v57 = vmul.f32 %v2423_v56, %v1178_v21  ;;  %v2485_v60 = vsel %vm774_vm13, 1.0, %v2163_v29 }
 0x357   : > { %v1125_v19 = vmul.f32 %v2444_v13, %v1118_v59  ;;  %v1157_v35 = vmul.f32 %v2444_v13, %v1150_v9  ;;  %v1126_v58 = vmul.f32 %v2465_v36, %v1122_v23  ;;  %v2490_v47 = vsel %vm775_vm14, 1.0, %v2163_v29 }
 0x358   : > { %v1647_v59 = vsub.f32 0.0, %v1643_v41  ;;  %v1646_v6 = vand.u32 2147483647, %v2470_v43  ;;  %v2494_v7 = vsel %vm776_vm15, 1.0, %v2163_v29  ;;  %v1206_v9 = vrot.slane %v2398_v14, %v2266_v46 }
 0x359   : > { %v1133_v28 = vsel %vm679_vm0, %v1125_v19, 0.0  ;;  %v1165_v54 = vsel %vm679_vm0, %v1157_v35, 0.0  ;;  %v1648_v12 = vsub.f32 0.0, %v1644_v37  ;;  %v1649_v15 = vsub.f32 0.0, %v1645_v42 }
 0x35a   : > { %1134 = vadd.xlane.f32.xlu0 %v1133_v28  ;;  %1163 = vadd.xlane.f32.xlu1 %v1162_v32  ;;  %v2501_v16 = vsel %vm777_vm1, 1.0, %v2163_v29  ;;  %v1210_v19 = vrot.slane %v2403_v22, %v2266_v46  ;;  %v1186_v21 = vrot.slane %v2441_v17, %v2258_v38  ;;  %v1214_v23 = vrot.slane %v2415_v40, %v2266_v46 }
 0x35b   : > { %v1194_v28 = vsel %vm679_vm0, %v1188_v57, 0.0  ;;  %v1136_v14 = vsel %vm679_vm0, %v1126_v58, 0.0  ;;  %v1158_v32 = vmul.f32 %v2465_v36, %v1154_v44  ;;  %v1189_v33 = vmul.f32 %v2444_v13, %v1182_v45 }
 0x35c   : > { %v1218_v22 = vrot.slane %v2441_v17, %v2266_v46  ;;  %v2517_v38 = vmul.f32 %v2490_v47, %v2423_v56  ;;  %v2519_v29 = vmul.f32 1.442695, %v1647_v59  ;;  %v1650_v40 = vsub.f32 0.0, %v1646_v6 }
 0x35d   : > { %v1219_v35 = vmul.f32 %v2409_v30, %v1206_v9  ;;  %v1653_v41 = vmul.f32 1.442695, %v1648_v12  ;;  %v2524_v37 = vmul.f32 %v2485_v60, %v2409_v30  ;;  %v1655_v42 = vmul.f32 1.442695, %v1649_v15 }
 0x35e   : > { %1192 = vadd.xlane.f32.xlu0 %v1191_v50  ;;  %1166 = vadd.xlane.f32.xlu1 %v1165_v54  ;;  %v1220_v44 = vmul.f32 %v2423_v56, %v1210_v19  ;;  %vm1544_vm2 = vcmp.gt.f32.partialorder %v2517_v38, 0.0  ;;  %v2530_v46 = vmul.f32 %v2494_v7, %v2444_v13  ;;  %v2534_v17 = vmul.f32 %v2501_v16, %v2465_v36  ;;  %v1985_v19 = vld [vmem:[%s2542_s25] ss:$0 sm:$0xff] }
 0x35f   : > { %v1168_v45 = vsel %vm679_vm0, %v1158_v32, 0.0  ;;  %v1197_v50 = vsel %vm679_vm0, %v1189_v33, 0.0  ;;  %v1548_v54 = vsel %vm1544_vm2, %v2248_v34, 4294967295  ;;  %vm1543_vm3 = vcmp.gt.f32.partialorder %v2524_v37, 0.0 }
 0x360   : > { %v1561_v57 = vsel %vm679_vm0, %v1548_v54, 2147483648  ;;  %v1547_v58 = vsel %vm1543_vm3, %v2248_v34, 4294967295  ;;  %vm1545_vm4 = vcmp.gt.f32.partialorder %v2530_v46, 0.0  ;;  %v1657_v59 = vmul.f32 1.442695, %v1650_v40 }
 0x361   : > { %v1562_v6 = vrot.slane %v1561_v57, 4  ;;  %v1551_v9 = vsel %vm679_vm0, %v1547_v58, 2147483648  ;;  %v1549_v12 = vsel %vm1545_vm4, %v2248_v34, 4294967295  ;;  %2048 = vpow2.f32 %v1655_v42 }
 0x362   : > { %1195 = vadd.xlane.f32.xlu1 %v1194_v28  ;;  %1137 = vadd.xlane.f32.xlu0 %v1136_v14  ;;  %v1223_v15 = vsel %vm679_vm0, %v1219_v35, 0.0  ;;  %v1552_v28 = vrot.slane %v1551_v9, 4  ;;  %v1571_v14 = vsel %vm679_vm0, %v1549_v12, 2147483648  ;;  %vm1546_vm5 = vcmp.gt.f32.partialorder %v2534_v17, 0.0 }
 0x363   : > { %v1226_v32 = vsel %vm679_vm0, %v1220_v44, 0.0  ;;  %v1190_v33 = vmul.f32 %v2465_v36, %v1186_v21  ;;  %v1221_v40 = vmul.f32 %v2444_v13, %v1214_v23  ;;  %vm1563_vm6 = vcmp.gt.s32.totalorder %v1561_v57, %v1562_v6 }
 0x364   : > { %vm1553_vm7 = vcmp.gt.s32.totalorder %v1551_v9, %v1552_v28  ;;  %v1572_v42 = vrot.slane %v1571_v14, 4  ;;  %2050 = vpow2.f32 %v1657_v59  ;;  %v1440_v35 = vmul.f32 %v1985_v19, %v2409_v30  ;;  %v1986_v59 = vld [vmem:[%s2542_s25 + $0x1] ss:$0 sm:$0xff] }
 0x365   : > { %v1554_v54 = vsel %vm1553_vm7, %v1551_v9, %v1552_v28  ;;  %v1550_v44 = vsel %vm1546_vm5, %v2248_v34, 4294967295  ;;  %v1222_v21 = vmul.f32 %v2465_v36, %v1218_v22  ;;  %v1987_v9 = vld [vmem:[%s2542_s25 + $0x2] ss:$0 sm:$0xff]  ;;  %2052 = vpow2.f32 %v1653_v41 }
 0x366   : > { %1169 = vadd.xlane.f32.xlu1 %v1168_v45  ;;  %1198 = vadd.xlane.f32.xlu0 %v1197_v50  ;;  %v1564_v45 = vsel %vm1563_vm6, %v1561_v57, %v1562_v6  ;;  %v1555_v23 = vrot.slane %v1554_v54, 2  ;;  %vm1573_vm8 = vcmp.gt.s32.totalorder %v1571_v14, %v1572_v42  ;;  %v1581_v58 = vsel %vm679_vm0, %v1550_v44, 2147483648 }
 0x367   : > { %v1565_v50 = vrot.slane %v1564_v45, 2  ;;  %v1200_v57 = vsel %vm679_vm0, %v1190_v33, 0.0  ;;  %v1229_v6 = vsel %vm679_vm0, %v1221_v40, 0.0  ;;  %v1574_v12 = vsel %vm1573_vm8, %v1571_v14, %v1572_v42 }
 0x368   : > { %vm1556_vm10 = vcmp.gt.s32.totalorder %v1554_v54, %v1555_v23  ;;  %v1575_v19 = vrot.slane %v1574_v12, 2  ;;  %v1582_v28 = vrot.slane %v1581_v58, 4  ;;  %v1444_v22 = vsel %vm679_vm0, %v1440_v35, 0.0 }
 0x369   : > { %vm1566_vm9 = vcmp.gt.s32.totalorder %v1564_v45, %v1565_v50  ;;  %v1557_v44 = vsel %vm1556_vm10, %v1554_v54, %v1555_v23  ;;  %v1441_v33 = vmul.f32 %v1986_v59, %v2423_v56  ;;  %v1232_v14 = vsel %vm679_vm0, %v1222_v21, 0.0 }
 0x36a   : > { %1224 = vadd.xlane.f32.xlu1 %v1223_v15  ;;  %1227 = vadd.xlane.f32.xlu0 %v1226_v32  ;;  %v1567_v15 = vsel %vm1566_vm9, %v1564_v45, %v1565_v50  ;;  %v1558_v10 = vrot.slane %v1557_v44, 1  ;;  %vm1576_vm11 = vcmp.gt.s32.totalorder %v1574_v12, %v1575_v19  ;;  %vm1583_vm12 = vcmp.gt.s32.totalorder %v1581_v58, %v1582_v28  ;;  %v1988_v50 = vld [vmem:[%s2542_s25 + $0x3] ss:$0 sm:$0xff] }
 0x36b   : > { %v1568_v32 = vrot.slane %v1567_v15, 1  ;;  %v2049_v40 = vpop.eup %2048  ;;  %v1442_v42 = vmul.f32 %v1987_v9, %v2444_v13  ;;  %v1577_v45 = vsel %vm1576_vm11, %v1574_v12, %v1575_v19  ;;  %v1584_v41 = vsel %vm1583_vm12, %v1581_v58, %v1582_v28 }
 0x36c   : > { %vm1559_vm14 = vcmp.gt.s32.totalorder %v1557_v44, %v1558_v10  ;;  %v1578_v35 = vrot.slane %v1577_v45, 1  ;;  %2054 = vpow2.f32 %v2519_v29  ;;  %v1585_v23 = vrot.slane %v1584_v41, 2 }
 0x36d   : > { %vm1569_vm13 = vcmp.gt.s32.totalorder %v1567_v15, %v1568_v32  ;;  %v1560_v54 = vsel %vm1559_vm14, %v1557_v44, %v1558_v10  ;;  %v870_v21 = vmul.f32 %v2409_v30, %v2284_v53  ;;  %v1661_v59 = vadd.f32 1.0, %v2049_v40 }
 0x36e   : > { %1201 = vadd.xlane.f32.xlu1 %v1200_v57  ;;  %1230 = vadd.xlane.f32.xlu0 %v1229_v6  ;;  %v1570_v57 = vsel %vm1569_vm13, %v1567_v15, %v1568_v32  ;;  %v2051_v6 = vpop.eup %2050  ;;  %vm1591_vm6 = vcmp.eq.s32.totalorder %v2248_v34, %v1560_v54  ;;  %vm1579_vm7 = vcmp.gt.s32.totalorder %v1577_v45, %v1578_v35  ;;  %v1447_v12 = vsel %vm679_vm0, %v1441_v33, 0.0 }
 0x36f   : > { %vm1592_vm15 = vcmp.eq.s32.totalorder %v2248_v34, %v1570_v57  ;;  %v1450_v58 = vsel %vm679_vm0, %v1442_v42, 0.0  ;;  %v1443_v10 = vmul.f32 %v1988_v50, %v2465_v36  ;;  %vm1595_vm8 = vmand %vm1591_vm6, %vm1543_vm3  ;;  %v1580_v9 = vsel %vm1579_vm7, %v1577_v45, %v1578_v35  ;;  %v2053_v33 = vpop.eup %2052 }
 0x370   : > { %vm1596_vm1 = vmand %vm1592_vm15, %vm1544_vm2  ;;  %v1599_v38 = vsel %vm1595_vm8, %v2356_v3, 0.0  ;;  %vm1586_vm2 = vcmp.gt.s32.totalorder %v1584_v41, %v1585_v23  ;;  %vm1593_vm9 = vcmp.eq.s32.totalorder %v2248_v34, %v1580_v9  ;;  %v871_v37 = vmul.f32 %v2423_v56, %v2296_v63 }
 0x371   : > { %v1600_v29 = vsel %vm1596_vm1, %v2361_v39, 0.0  ;;  %v1603_v19 = vsel %vm679_vm0, %v1599_v38, 0.0  ;;  %v1587_v28 = vsel %vm1586_vm2, %v1584_v41, %v1585_v23  ;;  %v872_v32 = vmul.f32 %v2444_v13, %v2305_v2  ;;  %vm1597_vm3 = vmand %vm1593_vm9, %vm1545_vm4 }
 0x372   : > { %1233 = vadd.xlane.f32.xlu1 %v1232_v14  ;;  %1445 = vadd.xlane.f32.xlu0 %v1444_v22  ;;  %v1610_v53 = vsel %vm679_vm0, %v1600_v29, 0.0  ;;  %v874_v22 = vsel %vm679_vm0, %v870_v21, 0.0  ;;  %v1588_v44 = vrot.slane %v1587_v28, 1  ;;  %v1453_v40 = vsel %vm679_vm0, %v1443_v10, 0.0 }
 0x373   : > { %v1611_v15 = vrot.slane %v1610_v53, 4  ;;  %v1604_v42 = vrot.slane %v1603_v19, 4  ;;  %v1601_v45 = vsel %vm1597_vm3, %v2366_v31, 0.0  ;;  %2056 = vlog2.f32 %v1661_v59 }
 0x374   : > { %v1617_v50 = vsel %vm679_vm0, %v1601_v45, 0.0  ;;  %vm1589_vm10 = vcmp.gt.s32.totalorder %v1587_v28, %v1588_v44  ;;  %v1662_v63 = vadd.f32 1.0, %v2051_v6  ;;  %v877_v46 = vsel %vm679_vm0, %v871_v37, 0.0 }
 0x375   : > { %v1612_v14 = vadd.f32 %v1611_v15, %v1610_v53  ;;  %v1618_v57 = vrot.slane %v1617_v50, 4  ;;  %v1590_v2 = vsel %vm1589_vm10, %v1587_v28, %v1588_v44  ;;  %v934_v35 = vmul.f32 %v2409_v30, %v2287_v55 }
 0x376   : > { %1448 = vadd.xlane.f32.xlu1 %v1447_v12  ;;  %1451 = vadd.xlane.f32.xlu0 %v1450_v58  ;;  %v935_v41 = vmul.f32 %v2423_v56, %v2272_v48  ;;  %vm1594_vm4 = vcmp.eq.s32.totalorder %v2248_v34, %v1590_v2  ;;  %v2055_v54 = vpop.eup %2054  ;;  %v880_v23 = vsel %vm679_vm0, %v872_v32, 0.0  ;;  %v1605_v12 = vadd.f32 %v1604_v42, %v1603_v19 }
 0x377   : > { %v1613_v21 = vrot.slane %v1612_v14, 2  ;;  %v1619_v59 = vadd.f32 %v1618_v57, %v1617_v50  ;;  %vm1598_vm11 = vmand %vm1594_vm4, %vm1546_vm5  ;;  %2058 = vlog2.f32 %v1662_v63  ;;  %v1660_v55 = vadd.f32 1.0, %v2053_v33 }
 0x378   : > { %v1602_v6 = vsel %vm1598_vm11, %v2368_v18, 0.0  ;;  %v938_v34 = vsel %vm679_vm0, %v934_v35, 0.0  ;;  %v936_v10 = vmul.f32 %v2444_v13, %v2299_v0  ;;  %v873_v29 = vmul.f32 %v2465_v36, %v2335_v24 }
 0x379   : > { %v1620_v58 = vrot.slane %v1619_v59, 2  ;;  %v1624_v48 = vsel %vm679_vm0, %v1602_v6, 0.0  ;;  %v941_v17 = vsel %vm679_vm0, %v935_v41, 0.0  ;;  %v1614_v38 = vadd.f32 %v1613_v21, %v1612_v14 }
 0x37a   : > { %1454 = vadd.xlane.f32.xlu1 %v1453_v40  ;;  %875 = vadd.xlane.f32.xlu0 %v874_v22  ;;  %v1625_v53 = vrot.slane %v1624_v48, 4  ;;  %v1606_v9 = vrot.slane %v1605_v12, 2  ;;  %2060 = vlog2.f32 %v1660_v55  ;;  %v1659_v28 = vadd.f32 1.0, %v2055_v54 }
 0x37b   : > { %v1621_v15 = vadd.f32 %v1620_v58, %v1619_v59  ;;  %v1633_v37 = vmax.f32 %v2456_v27, 0.0  ;;  %v944_v0 = vsel %vm679_vm0, %v936_v10, 0.0  ;;  %v883_v44 = vsel %vm679_vm0, %v873_v29, 0.0 }
 0x37c   : > { %v1626_v19 = vadd.f32 %v1625_v53, %v1624_v48  ;;  %v999_v24 = vmul.f32 %v2423_v56, %v2293_v62  ;;  %v998_v40 = vmul.f32 %v2409_v30, %v2281_v52  ;;  %v1615_v14 = vrot.slane %v1614_v38, 1 }
 0x37d   : > { %v1622_v22 = vrot.slane %v1621_v15, 1  ;;  %v2057_v32 = vpop.eup %2056  ;;  %v1607_v42 = vadd.f32 %v1606_v9, %v1605_v12  ;;  %2062 = vlog2.f32 %v1659_v28  ;;  %v1000_v62 = vmul.f32 %v2444_v13, %v2302_v1 }
 0x37e   : > { %878 = vadd.xlane.f32.xlu1 %v877_v46  ;;  %881 = vadd.xlane.f32.xlu0 %v880_v23  ;;  %v1627_v33 = vrot.slane %v1626_v19, 2  ;;  %v1668_v57 = vmul.f32 0.6931472, %v2057_v32  ;;  %v1005_v46 = vsel %vm679_vm0, %v999_v24, 0.0  ;;  %v937_v35 = vmul.f32 %v2465_v36, %v2311_v5 }
 0x37f   : > { %v1623_v45 = vadd.f32 %v1622_v22, %v1621_v15  ;;  %v1002_v41 = vsel %vm679_vm0, %v998_v40, 0.0  ;;  %v1616_v54 = vadd.f32 %v1615_v14, %v1614_v38  ;;  %v1608_v23 = vrot.slane %v1607_v42, 1  ;;  %v2669_v40 = vld [vmem:[%s2220_s27] sm:$0xff] }
 0x380   : > { %v1628_v50 = vadd.f32 %v1627_v33, %v1626_v19  ;;  %v1632_v59 = vmax.f32 %v2454_v25, 0.0  ;;  %vm1675_vm5 = vcmask 122880   ;;  %v1008_v1 = vsel %vm679_vm0, %v1000_v62, 0.0 }
 0x381   : > { %v1637_v63 = vmul.f32 %v1623_v45, %v2456_v27  ;;  %v2059_v2 = vpop.eup %2058  ;;  %v1634_v27 = vmax.f32 %v2470_v43, 0.0  ;;  %v823_v5 = vmul.f32 %v2423_v56, %v2278_v51  ;;  %v1001_v58 = vmul.f32 %v2465_v36, %v2338_v26 }
 0x382   : > { %939 = vadd.xlane.f32.xlu1 %v938_v34  ;;  %942 = vadd.xlane.f32.xlu0 %v941_v17  ;;  %v1629_v52 = vrot.slane %v1628_v50, 1  ;;  %v1670_v55 = vmul.f32 0.6931472, %v2059_v2  ;;  %v947_v10 = vsel %vm679_vm0, %v937_v35, 0.0  ;;  %v1636_v29 = vmul.f32 %v1616_v54, %v2454_v25 }
 0x383   : > { %v1641_v21 = vsub.f32 %v1633_v37, %v1637_v63  ;;  %v1609_v53 = vadd.f32 %v1608_v23, %v1607_v42  ;;  %v1631_v9 = vmax.f32 %v2448_v20, 0.0  ;;  %v824_v51 = vmul.f32 %v2444_v13, %v2290_v61  ;;  %v2672_v42 = vpop.permute.xlu0 %1722 }
 0x384   : > { %v1630_v12 = vadd.f32 %v1629_v52, %v1628_v50  ;;  %v2061_v34 = vpop.eup %2060  ;;  %v822_v26 = vmul.f32 %v2409_v30, %v2275_v49  ;;  %v829_v25 = vsel %vm679_vm0, %v823_v5, 0.0  ;;  %v1011_v19 = vsel %vm679_vm0, %v1001_v58, 0.0  ;;  %v2680_v50 = vpop.permute.xlu1 %1720 }
 0x385   : > { %v1673_v6 = vadd.f32 %v1668_v57, %v1641_v21  ;;  %v1666_v56 = vmul.f32 0.6931472, %v2061_v34  ;;  %v1640_v28 = vsub.f32 %v1632_v59, %v1636_v29  ;;  %v1635_v22 = vmul.f32 %v1609_v53, %v2448_v20  ;;  %v2685_v57 = vld [vmem:[%s2220_s27 + $0x10] sm:$0xff]  ;;  %v2703_v59 = vld [vmem:[%s2220_s27 + $0x18] sm:$0xff] }
 0x386   : > { %945 = vadd.xlane.f32.xlu0 %v944_v0  ;;  %884 = vadd.xlane.f32.xlu1 %v883_v44  ;;  %v1638_v48 = vmul.f32 %v1630_v12, %v2470_v43  ;;  %v832_v61 = vsel %vm679_vm0, %v824_v51, 0.0  ;;  %v826_v49 = vsel %vm679_vm0, %v822_v26, 0.0  ;;  %v825_v32 = vmul.f32 %v2465_v36, %v2308_v4  ;;  %v2677_v36 = vld [vmem:[%s2220_s27 + $0x8] sm:$0xff]  ;;  %s2166_s27 = smov 123  }
 0x387   : > { %v2648_v17 = vsel %vm1675_vm5, %v1673_v6, 0.0  ;;  %v2063_v15 = vpop.eup %2062  ;;  %v1672_v30 = vadd.f32 %v1666_v56, %v1640_v28  ;;  %v1639_v0 = vsub.f32 %v1631_v9, %v1635_v22  ;;  %v1991_v14 = vtrunc.f32 %v2669_v40 }
 0x388   : > { %v1642_v38 = vsub.f32 %v1634_v27, %v1638_v48  ;;  %v1664_v13 = vmul.f32 0.6931472, %v2063_v15  ;;  %v835_v44 = vsel %vm679_vm0, %v825_v32, 0.0  ;;  %v1993_v45 = vtrunc.f32 %v2677_v36 }
 0x389   : > { %v1679_v20 = vsel %vm1675_vm5, %v1672_v30, 0.0  ;;  %v2674_v4 = vcvt.f32.s32 %v1991_v14  ;;  %v1995_v2 = vtrunc.f32 %v2685_v57  ;;  %v1997_v6 = vtrunc.f32 %v2703_v59 }
 0x38a   : > { %1006 = vadd.xlane.f32.xlu0 %v1005_v46  ;;  %1003 = vadd.xlane.f32.xlu1 %v1002_v41  ;;  %v1674_v43 = vadd.f32 %v1670_v55, %v1642_v38  ;;  %v1671_v24 = vadd.f32 %v1664_v13, %v1639_v0  ;;  %v1994_v46 = vcvt.f32.s32 %v1993_v45 }
 0x38b   : > { %vm1263_vm0 = vcmp.eq.s32.totalorder %v2674_v4, 0  ;;  %vm1291_vm12 = vcmp.eq.s32.totalorder %v2674_v4, 1  ;;  %v2698_v23 = vcvt.f32.s32 %v1995_v2  ;;  %vm1319_vm1 = vcmp.eq.s32.totalorder %v2674_v4, 2 }
 0x38c   : > { %v2659_v37 = vsel %vm1675_vm5, %v1674_v43, 0.0  ;;  %v1676_v33 = vsel %vm1675_vm5, %v1671_v24, 0.0  ;;  %vm1264_vm13 = vcmp.eq.s32.totalorder %v1994_v46, 0  ;;  %vm1292_vm14 = vcmp.eq.s32.totalorder %v1994_v46, 1 }
 0x38d   : > { %vm1265_vm15 = vcmp.eq.s32.totalorder %v2698_v23, 0  ;;  %vm1293_vm6 = vcmp.eq.s32.totalorder %v2698_v23, 1  ;;  %v2716_v29 = vcvt.f32.s32 %v1997_v6  ;;  %vm1320_vm7 = vcmp.eq.s32.totalorder %v1994_v46, 2 }
 0x38e   : > { %1009 = vadd.xlane.f32.xlu0 %v1008_v1  ;;  %948 = vadd.xlane.f32.xlu1 %v947_v10  ;;  %vm1321_vm2 = vcmp.eq.s32.totalorder %v2698_v23, 2  ;;  %vm1348_vm3 = vcmp.eq.s32.totalorder %v1994_v46, 3  ;;  %vm1347_vm10 = vcmp.eq.s32.totalorder %v2674_v4, 3  ;;  %vm1349_vm4 = vcmp.eq.s32.totalorder %v2698_v23, 3 }
 0x38f   : > { %vm1266_vm8 = vcmp.eq.s32.totalorder %v2716_v29, 0  ;;  %vm1294_vm9 = vcmp.eq.s32.totalorder %v2716_v29, 1  ;;  %vm1322_vm11 = vcmp.eq.s32.totalorder %v2716_v29, 2  ;;  %vm1350_vm5 = vcmp.eq.s32.totalorder %v2716_v29, 3 }
 0x392   : > { %830 = vadd.xlane.f32.xlu0 %v829_v25  ;;  %1012 = vadd.xlane.f32.xlu1 %v1011_v19 }
 0x396   : > { %833 = vadd.xlane.f32.xlu0 %v832_v61  ;;  %827 = vadd.xlane.f32.xlu1 %v826_v49 }
 0x39a   : > { %1680 = vadd.xlane.f32.xlu0 %v1679_v20  ;;  %836 = vadd.xlane.f32.xlu1 %v835_v44 }
 0x39e   : > { %1677 = vadd.xlane.f32.xlu1 %v1676_v33 }
 0x3df   : > { %v2682_v63 = vpop.xlane.xlu0 %1128 }
 0x3e0   : > { %v1267_v52 = vsel %vm1263_vm0, %v2682_v63, 0.0 }
 0x3e3   : > { %v2690_v62 = vpop.xlane.xlu0 %1160  ;;  %v2692_v35 = vpop.xlane.xlu1 %1131 }
 0x3e4   : > { %v1235_v41 = vmax.f32 %v2682_v63, %v2690_v62  ;;  %v1295_v54 = vsel %vm1291_vm12, %v2690_v62, 0.0  ;;  %v1268_v55 = vsel %vm1264_vm13, %v2692_v35, 0.0 }
 0x3e5   : > { %v1299_v21 = vadd.f32 %v1295_v54, %v1267_v52 }
 0x3e7   : > { %v2700_v12 = vpop.xlane.xlu0 %1134  ;;  %v1164_v27 = vpop.xlane.xlu1 %1163 }
 0x3e8   : > { %v1236_v1 = vmax.f32 %v2692_v35, %v1164_v27  ;;  %v1296_v5 = vsel %vm1292_vm14, %v1164_v27, 0.0  ;;  %v1269_v48 = vsel %vm1265_vm15, %v2700_v12, 0.0 }
 0x3e9   : > { %v1300_v58 = vadd.f32 %v1296_v5, %v1268_v55 }
 0x3eb   : > { %v2712_v34 = vpop.xlane.xlu0 %1192  ;;  %v2714_v10 = vpop.xlane.xlu1 %1166 }
 0x3ec   : > { %v1239_v53 = vmax.f32 %v1235_v41, %v2712_v34  ;;  %v1323_v38 = vsel %vm1319_vm1, %v2712_v34, 0.0  ;;  %v1237_v9 = vmax.f32 %v2700_v12, %v2714_v10  ;;  %v1297_v51 = vsel %vm1293_vm6, %v2714_v10, 0.0 }
 0x3ed   : > { %v1327_v26 = vadd.f32 %v1323_v38, %v1299_v21  ;;  %v1301_v56 = vadd.f32 %v1297_v51, %v1269_v48 }
 0x3ef   : > { %v2723_v43 = vpop.xlane.xlu0 %1137  ;;  %v1196_v15 = vpop.xlane.xlu1 %1195 }
 0x3f0   : > { %v1240_v25 = vmax.f32 %v1236_v1, %v1196_v15  ;;  %v1324_v19 = vsel %vm1320_vm7, %v1196_v15, 0.0  ;;  %v1270_v22 = vsel %vm1266_vm8, %v2723_v43, 0.0 }
 0x3f1   : > { %v1328_v28 = vadd.f32 %v1324_v19, %v1300_v58 }
 0x3f3   : > { %v2729_v61 = vpop.xlane.xlu0 %1198  ;;  %v2731_v13 = vpop.xlane.xlu1 %1169 }
 0x3f4   : > { %v1241_v49 = vmax.f32 %v1237_v9, %v2729_v61  ;;  %v1325_v30 = vsel %vm1321_vm2, %v2729_v61, 0.0  ;;  %v1238_v32 = vmax.f32 %v2723_v43, %v2731_v13  ;;  %v1298_v0 = vsel %vm1294_vm9, %v2731_v13, 0.0 }
 0x3f5   : > { %v1329_v20 = vadd.f32 %v1325_v30, %v1301_v56  ;;  %v1302_v44 = vadd.f32 %v1298_v0, %v1270_v22 }
 0x3f7   : > { %v1228_v24 = vpop.xlane.xlu0 %1227  ;;  %v1225_v33 = vpop.xlane.xlu1 %1224 }
 0x3f8   : > { %v2739_v14 = vmax.f32 %v1240_v25, %v1228_v24  ;;  %v1352_v45 = vsel %vm1348_vm3, %v1228_v24, 0.0  ;;  %v2741_v2 = vmax.f32 %v1239_v53, %v1225_v33  ;;  %v1351_v52 = vsel %vm1347_vm10, %v1225_v33, 0.0 }
 0x3f9   : > { %v2743_v41 = vadd.f32 %v1352_v45, %v1328_v28  ;;  %v2745_v54 = vadd.f32 %v1351_v52, %v1327_v26  ;;  %vm1504_vm10 = vcmask 48168  }
 0x3fa   : > { %v1248_v21 = vsub.f32 %v2692_v35, %v2739_v14  ;;  %v1276_v6 = vsub.f32 %v1164_v27, %v2739_v14  ;;  %v1304_v46 = vsub.f32 %v1196_v15, %v2739_v14  ;;  %v1332_v4 = vsub.f32 %v1228_v24, %v2739_v14 }
 0x3fb   : > { %v1247_v55 = vsub.f32 %v2682_v63, %v2741_v2  ;;  %v1275_v1 = vsub.f32 %v2690_v62, %v2741_v2  ;;  %v1303_v5 = vsub.f32 %v2712_v34, %v2741_v2  ;;  %v1331_v58 = vsub.f32 %v1225_v33, %v2741_v2  ;;  %v1231_v48 = vpop.xlane.xlu0 %1230  ;;  %v1202_v53 = vpop.xlane.xlu1 %1201 }
 0x3fc   : > { %v1253_v35 = vmul.f32 1.442695, %v1248_v21  ;;  %v1281_v38 = vmul.f32 1.442695, %v1276_v6  ;;  %v1309_v27 = vmul.f32 1.442695, %v1304_v46  ;;  %v2759_v9 = vmax.f32 %v1241_v49, %v1231_v48 }
 0x3fd   : > { %v1337_v51 = vmul.f32 1.442695, %v1332_v4  ;;  %v1251_v63 = vmul.f32 1.442695, %v1247_v55  ;;  %v1279_v62 = vmul.f32 1.442695, %v1275_v1  ;;  %v1242_v30 = vmax.f32 %v1238_v32, %v1202_v53 }
 0x3fe   : > { %2064 = vpow2.f32 %v1253_v35  ;;  %v1249_v34 = vsub.f32 %v2700_v12, %v2759_v9  ;;  %v1277_v26 = vsub.f32 %v2714_v10, %v2759_v9  ;;  %v1305_v56 = vsub.f32 %v2729_v61, %v2759_v9 }
 0x3ff   : > { %2066 = vpow2.f32 %v1281_v38  ;;  %v1333_v15 = vsub.f32 %v1231_v48, %v2759_v9  ;;  %v2770_v25 = vpop.xlane.xlu0 %1445  ;;  %v1234_v23 = vpop.xlane.xlu1 %1233  ;;  %v1307_v19 = vmul.f32 1.442695, %v1303_v5  ;;  %v1353_v28 = vsel %vm1349_vm4, %v1231_v48, 0.0 }
 0x400   : > { %2068 = vpow2.f32 %v1309_v27  ;;  %v1326_v22 = vsel %vm1322_vm11, %v1202_v53, 0.0  ;;  %v1335_v49 = vmul.f32 1.442695, %v1331_v58  ;;  %v1255_v12 = vmul.f32 1.442695, %v1249_v34 }
 0x401   : > { %2070 = vpow2.f32 %v1337_v51  ;;  %v2773_v10 = vadd.f32 %v1353_v28, %v1329_v20  ;;  %v1330_v0 = vadd.f32 %v1326_v22, %v1302_v44  ;;  %v1283_v61 = vmul.f32 1.442695, %v1277_v26 }
 0x402   : > { %2072 = vpow2.f32 %v1251_v63  ;;  %v2775_v24 = vmax.f32 %v1242_v30, %v1234_v23  ;;  %v1354_v52 = vsel %vm1350_vm5, %v1234_v23, 0.0  ;;  %v1311_v21 = vmul.f32 1.442695, %v1305_v56 }
 0x403   : > { %2074 = vpow2.f32 %v1279_v62  ;;  %v2777_v33 = vpop.xlane.xlu0 %1451  ;;  %v2779_v45 = vpop.xlane.xlu1 %1448  ;;  %v1339_v32 = vmul.f32 1.442695, %v1333_v15  ;;  %v2787_v4 = vadd.f32 %v1354_v52, %v1330_v0  ;;  %vm1379_vm4 = vcmask 39968  }
 0x404   : > { %2076 = vpow2.f32 %v1307_v19  ;;  %v1250_v29 = vsub.f32 %v2723_v43, %v2775_v24  ;;  %v1278_v20 = vsub.f32 %v2731_v13, %v2775_v24  ;;  %v1306_v44 = vsub.f32 %v1202_v53, %v2775_v24 }
 0x405   : > { %2078 = vpow2.f32 %v1335_v49  ;;  %v1334_v46 = vsub.f32 %v1234_v23, %v2775_v24 }
 0x406   : > { %2080 = vpow2.f32 %v1255_v12  ;;  %v1257_v6 = vmul.f32 1.442695, %v1250_v29  ;;  %v1285_v5 = vmul.f32 1.442695, %v1278_v20  ;;  %v1313_v38 = vmul.f32 1.442695, %v1306_v44 }
 0x407   : > { %2082 = vpow2.f32 %v1283_v61  ;;  %v2789_v55 = vpop.xlane.xlu1 %1454  ;;  %v876_v58 = vpop.xlane.xlu0 %875  ;;  %v1341_v53 = vmul.f32 1.442695, %v1334_v46 }
 0x408   : > { %v2065_v1 = vpop.eup %2064  ;;  %2084 = vpow2.f32 %v1311_v21  ;;  %v886_v27 = vsub.f32 %v876_v58, %v2669_v40 }
 0x409   : > { %v2067_v48 = vpop.eup %2066  ;;  %2086 = vpow2.f32 %v1339_v32 }
 0x40a   : > { %v2069_v43 = vpop.eup %2068  ;;  %v1288_v35 = vadd.f32 %v2067_v48, %v2065_v1  ;;  %2088 = vpow2.f32 %v1257_v6  ;;  %v898_v23 = vmul.f32 5.0, %v886_v27  ;;  %v890_v28 = vand.u32 2147483647, %v886_v27 }
 0x40b   : > { %v2071_v13 = vpop.eup %2070  ;;  %2090 = vpow2.f32 %v1285_v5  ;;  %v879_v34 = vpop.xlane.xlu1 %878 }
 0x40c   : > { %v2073_v51 = vpop.eup %2072  ;;  %v1316_v63 = vadd.f32 %v2069_v43, %v1288_v35  ;;  %2092 = vpow2.f32 %v1313_v38  ;;  %v882_v30 = vpop.xlane.xlu0 %881  ;;  %v887_v12 = vsub.f32 %v879_v34, %v2677_v36  ;;  %v902_v21 = vmul.f32 %v898_v23, %v886_v27 }
 0x40d   : > { %v2075_v62 = vpop.eup %2074  ;;  %2094 = vpow2.f32 %v1341_v53  ;;  %v888_v32 = vsub.f32 %v882_v30, %v2685_v57  ;;  %vm894_vm0 = vcmp.lt.f32.partialorder %v890_v28, 0.1  ;;  %v1973_v5 = vadd.f32 -0.05, %v890_v28 }
 0x40e   : > { %v2077_v26 = vpop.eup %2076  ;;  %v1344_v56 = vadd.f32 %v2071_v13, %v1316_v63  ;;  %v1287_v15 = vadd.f32 %v2075_v62, %v2073_v51  ;;  %v899_v20 = vmul.f32 5.0, %v887_v12  ;;  %v891_v1 = vand.u32 2147483647, %v887_v12 }
 0x40f   : > { %v2079_v19 = vpop.eup %2078  ;;  %v940_v44 = vpop.xlane.xlu1 %939  ;;  %v1469_v35 = vand.u32 2147483647, %v2779_v45  ;;  %v910_v38 = vsel %vm894_vm0, %v902_v21, %v1973_v5  ;;  %v900_v62 = vmul.f32 5.0, %v888_v32  ;;  %v1468_v21 = vand.u32 2147483647, %v2770_v25 }
 0x410   : > { %v2081_v22 = vpop.eup %2080  ;;  %2096 = vlog2.f32 %v1344_v56  ;;  %v1315_v49 = vadd.f32 %v2077_v26, %v1287_v15  ;;  %v950_v13 = vsub.f32 %v940_v44, %v2669_v40  ;;  %v903_v27 = vmul.f32 %v899_v20, %v887_v12  ;;  %918 = vrot.lane.b32.xlu0 %v910_v38, %s2159_s29  ;;  %v943_v51 = vpop.xlane.xlu0 %942 }
 0x411   : > { %v2083_v0 = vpop.eup %2082  ;;  %vm895_vm12 = vcmp.lt.f32.partialorder %v891_v1, 0.1  ;;  %v1974_v56 = vadd.f32 -0.05, %v891_v1  ;;  %v1473_v23 = vsub.f32 0.0, %v1469_v35  ;;  %v951_v28 = vsub.f32 %v943_v51, %v2677_v36 }
 0x412   : > { %v1343_v61 = vadd.f32 %v2079_v19, %v1315_v49  ;;  %v1289_v52 = vadd.f32 %v2083_v0, %v2081_v22  ;;  %v2085_v29 = vpop.eup %2084  ;;  %v892_v19 = vand.u32 2147483647, %v888_v32  ;;  %v962_v22 = vmul.f32 5.0, %v950_v13 }
 0x413   : > { %v2087_v6 = vpop.eup %2086  ;;  %v954_v0 = vand.u32 2147483647, %v950_v13  ;;  %v911_v12 = vsel %vm895_vm12, %v903_v27, %v1974_v56  ;;  %v1478_v44 = vmul.f32 1.442695, %v1473_v23 }
 0x414   : > { %2098 = vlog2.f32 %v1343_v61  ;;  %v1317_v46 = vadd.f32 %v2085_v29, %v1289_v52  ;;  %v2089_v58 = vpop.eup %2088  ;;  %v904_v61 = vmul.f32 %v900_v62, %v888_v32  ;;  %920 = vrot.lane.b32.xlu1 %v911_v12, %s2159_s29  ;;  %v885_v29 = vpop.xlane.xlu1 %884  ;;  %vm896_vm13 = vcmp.lt.f32.partialorder %v892_v19, 0.1 }
 0x415   : > { %v2091_v48 = vpop.eup %2090  ;;  %vm958_vm14 = vcmp.lt.f32.partialorder %v954_v0, 0.1  ;;  %v955_v32 = vand.u32 2147483647, %v951_v28  ;;  %v1977_v35 = vadd.f32 -0.05, %v954_v0 }
 0x416   : > { %v1345_v43 = vadd.f32 %v2087_v6, %v1317_v46  ;;  %v1290_v53 = vadd.f32 %v2091_v48, %v2089_v58  ;;  %v2093_v63 = vpop.eup %2092  ;;  %v966_v6 = vmul.f32 %v962_v22, %v950_v13  ;;  %v1975_v46 = vadd.f32 -0.05, %v892_v19  ;;  %v946_v48 = vpop.xlane.xlu0 %945 }
 0x417   : > { %v2095_v34 = vpop.eup %2094  ;;  %v963_v58 = vmul.f32 5.0, %v951_v28  ;;  %vm959_vm15 = vcmp.lt.f32.partialorder %v955_v32, 0.1  ;;  %v1978_v23 = vadd.f32 -0.05, %v955_v32 }
 0x418   : > { %2100 = vlog2.f32 %v1345_v43  ;;  %v1318_v26 = vadd.f32 %v2093_v63, %v1290_v53  ;;  %v912_v43 = vsel %vm896_vm13, %v904_v61, %v1975_v46  ;;  %v1472_v53 = vsub.f32 0.0, %v1468_v21 }
 0x419   : > { %922 = vrot.lane.b32.xlu1 %v912_v43, %s2159_s29  ;;  %v974_v27 = vsel %vm958_vm14, %v966_v6, %v1977_v35  ;;  %v967_v62 = vmul.f32 %v963_v58, %v951_v28  ;;  %v1471_v19 = vand.u32 2147483647, %v2789_v55  ;;  %v952_v61 = vsub.f32 %v946_v48, %v2685_v57 }
 0x41a   : > { %v2097_v15 = vpop.eup %2096  ;;  %v1346_v30 = vadd.f32 %v2095_v34, %v1318_v26  ;;  %982 = vrot.lane.b32.xlu0 %v974_v27, %s2164_s23  ;;  %v1004_v34 = vpop.xlane.xlu1 %1003  ;;  %v1476_v56 = vmul.f32 1.442695, %v1472_v53 }
 0x41b   : > { %v1362_v49 = vmul.f32 0.6931472, %v2097_v15  ;;  %v1470_v15 = vand.u32 2147483647, %v2777_v33  ;;  %v975_v0 = vsel %vm959_vm15, %v967_v62, %v1978_v23  ;;  %v1475_v6 = vsub.f32 0.0, %v1471_v19 }
 0x41c   : > { %2102 = vlog2.f32 %v1346_v30  ;;  %v964_v32 = vmul.f32 5.0, %v952_v61  ;;  %v956_v27 = vand.u32 2147483647, %v952_v61 }
 0x41d   : > { %v2800_v52 = vadd.f32 %v1362_v49, %v2739_v14  ;;  %v889_v14 = vsub.f32 %v885_v29, %v2703_v59  ;;  %2104 = vpow2.f32 %v1478_v44  ;;  %v1007_v49 = vpop.xlane.xlu0 %1006  ;;  %984 = vrot.lane.b32.xlu1 %v975_v0, %s2164_s23  ;;  %v1014_v29 = vsub.f32 %v1004_v34, %v2669_v40 }
 0x41e   : > { %v2099_v20 = vpop.eup %2098  ;;  %2106 = vpow2.f32 %v1476_v56  ;;  %vm960_vm6 = vcmp.lt.f32.partialorder %v956_v27, 0.1  ;;  %v792_v0 = vrot.slane %v2490_v47, 4 }
 0x41f   : > { %v1372_v1 = vsub.f32 %v2800_v52, %v2743_v41  ;;  %v1360_v5 = vmul.f32 0.6931472, %v2099_v20  ;;  %v901_v26 = vmul.f32 5.0, %v889_v14  ;;  %v893_v22 = vand.u32 2147483647, %v889_v14  ;;  %v949_v20 = vpop.xlane.xlu1 %948 }
 0x420   : > { %v953_v43 = vsub.f32 %v949_v20, %v2703_v59  ;;  %v1026_v53 = vmul.f32 5.0, %v1014_v29 }
 0x421   : > { %v2807_v38 = vadd.f32 %v1360_v5, %v2741_v2  ;;  %v905_v21 = vmul.f32 %v901_v26, %v889_v14  ;;  %vm897_vm1 = vcmp.lt.f32.partialorder %v893_v22, 0.1  ;;  %v1976_v46 = vadd.f32 -0.05, %v893_v22  ;;  %v1010_v48 = vpop.xlane.xlu0 %1009 }
 0x422   : > { %v2101_v13 = vpop.eup %2100  ;;  %v1015_v5 = vsub.f32 %v1007_v49, %v2677_v36  ;;  %v1016_v34 = vsub.f32 %v1010_v48, %v2685_v57  ;;  %v968_v26 = vmul.f32 %v964_v32, %v952_v61  ;;  %v1030_v22 = vmul.f32 %v1026_v53, %v1014_v29 }
 0x423   : > { %v1371_v51 = vsub.f32 %v2807_v38, %v2745_v54  ;;  %v1364_v63 = vmul.f32 0.6931472, %v2101_v13  ;;  %v913_v14 = vsel %vm897_vm1, %v905_v21, %v1976_v46  ;;  %v1013_v23 = vpop.xlane.xlu1 %1012  ;;  %v957_v49 = vand.u32 2147483647, %v953_v43 }
 0x424   : > { %924 = vrot.lane.b32.xlu0 %v913_v14, %s2159_s29  ;;  %v1027_v62 = vmul.f32 5.0, %v1015_v5  ;;  %v1019_v56 = vand.u32 2147483647, %v1015_v5  ;;  %v1017_v61 = vsub.f32 %v1013_v23, %v2703_v59 }
 0x425   : > { %v2814_v2 = vadd.f32 %v1364_v63, %v2759_v9  ;;  %v1474_v9 = vsub.f32 0.0, %v1470_v15  ;;  %v1018_v63 = vand.u32 2147483647, %v1014_v29  ;;  %v965_v15 = vmul.f32 5.0, %v953_v43 }
 0x426   : > { %v2103_v30 = vpop.eup %2102  ;;  %v1031_v21 = vmul.f32 %v1027_v62, %v1015_v5  ;;  %vm2837_vm8 = vcmp.lt.f32.partialorder %v1019_v56, 0.1  ;;  %v1021_v14 = vand.u32 2147483647, %v1017_v61  ;;  %v1982_v53 = vadd.f32 -0.05, %v1019_v56 }
 0x427   : > { %v1373_v28 = vsub.f32 %v2814_v2, %v2773_v10  ;;  %v1366_v12 = vmul.f32 0.6931472, %v2103_v30  ;;  %v1480_v35 = vmul.f32 1.442695, %v1474_v9  ;;  %v2105_v13 = vpop.eup %2104  ;;  %v1979_v30 = vadd.f32 -0.05, %v956_v27 }
 0x428   : > { %v1485_v19 = vadd.f32 1.0, %v2105_v13  ;;  %vm2832_vm7 = vcmp.lt.f32.partialorder %v1018_v63, 0.1  ;;  %v1020_v9 = vand.u32 2147483647, %v1016_v34  ;;  %v969_v46 = vmul.f32 %v965_v15, %v953_v43 }
 0x429   : > { %v2824_v44 = vadd.f32 %v1366_v12, %v2775_v24  ;;  %v1482_v24 = vmul.f32 1.442695, %v1475_v6  ;;  %2108 = vpow2.f32 %v1480_v35  ;;  %v2107_v12 = vpop.eup %2106  ;;  %v1981_v20 = vadd.f32 -0.05, %v1018_v63 }
 0x42a   : > { %v1028_v6 = vmul.f32 5.0, %v1016_v34  ;;  %v976_v32 = vsel %vm960_vm6, %v968_v26, %v1979_v30  ;;  %v1029_v35 = vmul.f32 5.0, %v1017_v61  ;;  %v1484_v5 = vadd.f32 1.0, %v2107_v12 }
 0x42b   : > { %v1374_v58 = vsub.f32 %v2824_v44, %v2787_v4  ;;  %2110 = vpow2.f32 %v1482_v24  ;;  %986 = vrot.lane.b32.xlu1 %v976_v32, %s2164_s23  ;;  %v1038_v29 = vsel %vm2832_vm7, %v1030_v22, %v1981_v20  ;;  %vm961_vm2 = vcmp.lt.f32.partialorder %v957_v49, 0.1 }
 0x42c   : > { %1046 = vrot.lane.b32.xlu0 %v1038_v29, %s2165_s26  ;;  %v1980_v13 = vadd.f32 -0.05, %v957_v49  ;;  %v1032_v24 = vmul.f32 %v1028_v6, %v1016_v34  ;;  %v1983_v43 = vadd.f32 -0.05, %v1020_v9  ;;  %v1033_v27 = vmul.f32 %v1029_v35, %v1017_v61 }
 0x42d   : > { %v1039_v63 = vsel %vm2837_vm8, %v1031_v21, %v1982_v53  ;;  %2112 = vlog2.f32 %v1485_v19  ;;  %vm1024_vm9 = vcmp.lt.f32.partialorder %v1020_v9, 0.1  ;;  %vm1025_vm3 = vcmp.lt.f32.partialorder %v1021_v14, 0.1 }
 0x42e   : > { %v977_v62 = vsel %vm961_vm2, %v969_v46, %v1980_v13  ;;  %2114 = vlog2.f32 %v1484_v5  ;;  %v1984_v26 = vadd.f32 -0.05, %v1021_v14  ;;  %v1040_v23 = vsel %vm1024_vm9, %v1032_v24, %v1983_v43 }
 0x42f   : > { %1048 = vrot.lane.b32.xlu1 %v1039_v63, %s2165_s26  ;;  %v1457_v12 = vmax.f32 %v2779_v45, 0.0  ;;  %v1461_v21 = vmul.f32 %v2677_v36, %v2779_v45  ;;  %v1456_v9 = vmax.f32 %v2770_v25, 0.0  ;;  %v1460_v20 = vmul.f32 %v2669_v40, %v2770_v25 }
 0x430   : > { %988 = vrot.lane.b32.xlu0 %v977_v62, %s2164_s23  ;;  %v1041_v22 = vsel %vm1025_vm3, %v1033_v27, %v1984_v26  ;;  %v786_v61 = vrot.slane %v2485_v60, 4  ;;  %v793_v32 = vadd.f32 %v2490_v47, %v792_v0  ;;  %v798_v5 = vrot.slane %v2494_v7, 4 }
 0x431   : > { %v1465_v48 = vsub.f32 %v1457_v12, %v1461_v21  ;;  %v1464_v29 = vsub.f32 %v1456_v9, %v1460_v20  ;;  %v804_v24 = vrot.slane %v2501_v16, 4  ;;  %v1458_v26 = vmax.f32 %v2777_v33, 0.0 }
 0x432   : > { %v787_v14 = vadd.f32 %v2485_v60, %v786_v61  ;;  %v794_v45 = vrot.slane %v793_v32, 2  ;;  %vm1066_vm6 = vcmask 7168   ;;  %vm1737_vm7 = vcmask 0  }
 0x433   : > { %v2109_v56 = vpop.eup %2108  ;;  %1050 = vrot.lane.b32.xlu1 %v1040_v23, %s2165_s26  ;;  %v1459_v23 = vmax.f32 %v2789_v55, 0.0 }
 0x434   : > { %1052 = vrot.lane.b32.xlu0 %v1041_v22, %s2165_s26  ;;  %v1486_v34 = vadd.f32 1.0, %v2109_v56  ;;  %v788_v13 = vrot.slane %v787_v14, 2  ;;  %v795_v63 = vadd.f32 %v794_v45, %v793_v32  ;;  %v1462_v56 = vmul.f32 %v2685_v57, %v2777_v33 }
 0x435   : > { %v2111_v15 = vpop.eup %2110  ;;  %v1463_v22 = vmul.f32 %v2703_v59, %v2789_v55  ;;  %v1375_v33 = vmul.f32 %v2485_v60, %v1371_v51  ;;  %v1378_v51 = vmul.f32 %v2501_v16, %v1374_v58 }
 0x436   : > { %v1487_v49 = vadd.f32 1.0, %v2111_v15  ;;  %2116 = vlog2.f32 %v1486_v34  ;;  %v799_v15 = vadd.f32 %v2494_v7, %v798_v5  ;;  %v789_v34 = vadd.f32 %v788_v13, %v787_v14 }
 0x437   : > { %v2113_v30 = vpop.eup %2112  ;;  %v1466_v21 = vsub.f32 %v1458_v26, %v1462_v56  ;;  %v796_v9 = vrot.slane %v795_v63, 1  ;;  %v1467_v52 = vsub.f32 %v1459_v23, %v1463_v22  ;;  %v1380_v38 = vsel %vm1379_vm4, %v1375_v33, 0.0 }
 0x438   : > { %v2115_v19 = vpop.eup %2114  ;;  %v1491_v6 = vmul.f32 0.6931472, %v2113_v30  ;;  %2118 = vlog2.f32 %v1487_v49  ;;  %v1376_v49 = vmul.f32 %v2490_v47, %v1372_v1  ;;  %v800_v20 = vrot.slane %v799_v15, 2 }
 0x439   : > { %v1489_v46 = vmul.f32 0.6931472, %v2115_v19  ;;  %v805_v19 = vadd.f32 %v2501_v16, %v804_v24  ;;  %v790_v1 = vrot.slane %v789_v34, 1  ;;  %v1381_v45 = vrot.slane %v1380_v38, 4 }
 0x43a   : > { %v1497_v35 = vadd.f32 %v1491_v6, %v1465_v48  ;;  %v1387_v61 = vsel %vm1379_vm4, %v1376_v49, 0.0  ;;  %v1377_v6 = vmul.f32 %v2494_v7, %v1373_v28  ;;  %v801_v14 = vadd.f32 %v800_v20, %v799_v15 }
 0x43b   : > { %v1496_v53 = vadd.f32 %v1489_v46, %v1464_v29  ;;  %v806_v48 = vrot.slane %v805_v19, 2  ;;  %v2889_v29 = vadd.f32 %v796_v9, %v795_v63  ;;  %v1401_v5 = vsel %vm1379_vm4, %v1378_v51, 0.0 }
 0x43c   : > { %v1501_v25 = vmul.f32 %v2490_v47, %v1497_v35  ;;  %v1388_v35 = vrot.slane %v1387_v61, 4  ;;  %v1394_v10 = vsel %vm1379_vm4, %v1377_v6, 0.0  ;;  %v2895_v4 = vadd.f32 %v790_v1, %v789_v34 }
 0x43d   : > { %v1500_v27 = vmul.f32 %v2485_v60, %v1496_v53  ;;  %v807_v44 = vadd.f32 %v806_v48, %v805_v19  ;;  %v811_v58 = vmax.f32 %v2889_v29, 1.0  ;;  %v1382_v63 = vadd.f32 %v1381_v45, %v1380_v38 }
 0x43e   : > { %v1512_v0 = vsel %vm1504_vm10, %v1501_v25, 0.0  ;;  %v802_v25 = vrot.slane %v801_v14, 1  ;;  %v1389_v24 = vadd.f32 %v1388_v35, %v1387_v61  ;;  %v810_v23 = vmax.f32 %v2895_v4, 1.0 }
 0x43f   : > { %v1505_v12 = vsel %vm1504_vm10, %v1500_v27, 0.0  ;;  %v1513_v41 = vrot.slane %v1512_v0, 4  ;;  %v808_v22 = vrot.slane %v807_v44, 1  ;;  %2120 = vrcp.f32 %v811_v58 }
 0x440   : > { %v2117_v43 = vpop.eup %2116  ;;  %v1506_v46 = vrot.slane %v1505_v12, 4  ;;  %v2904_v34 = vadd.f32 %v802_v25, %v801_v14  ;;  %v1390_v49 = vrot.slane %v1389_v24, 2  ;;  %2122 = vrcp.f32 %v810_v23 }
 0x441   : > { %v1493_v30 = vmul.f32 0.6931472, %v2117_v43  ;;  %v1514_v53 = vadd.f32 %v1513_v41, %v1512_v0  ;;  %v1395_v43 = vrot.slane %v1394_v10, 4  ;;  %vm815_vm11 = vcmp.gt.f32.partialorder %v2889_v29, 0.0 }
 0x442   : > { %v2119_v62 = vpop.eup %2118  ;;  %v1507_v28 = vadd.f32 %v1506_v46, %v1505_v12  ;;  %v812_v9 = vmax.f32 %v2904_v34, 1.0  ;;  %v1391_v1 = vadd.f32 %v1390_v49, %v1389_v24  ;;  %vm814_vm5 = vcmp.gt.f32.partialorder %v2895_v4, 0.0  ;;  %v2142_v4 = vld [vmem:[%s2380_s12 + $0x2] sm:$0x1] }
 0x443   : > { %v1495_v55 = vmul.f32 0.6931472, %v2119_v62  ;;  %v1498_v54 = vadd.f32 %v1493_v30, %v1466_v21  ;;  %v1515_v27 = vrot.slane %v1514_v53, 2  ;;  %v1402_v62 = vrot.slane %v1401_v5, 4 }
 0x444   : > { %v1508_v56 = vrot.slane %v1507_v28, 2  ;;  %v1396_v30 = vadd.f32 %v1395_v43, %v1394_v10  ;;  %v2909_v21 = vadd.f32 %v808_v22, %v807_v44  ;;  %2124 = vrcp.f32 %v812_v9 }
 0x445   : > { %v1499_v32 = vadd.f32 %v1495_v55, %v1467_v52  ;;  %v1502_v2 = vmul.f32 %v2494_v7, %v1498_v54  ;;  %v1403_v19 = vadd.f32 %v1402_v62, %v1401_v5  ;;  %v1383_v55 = vrot.slane %v1382_v63, 2 }
 0x446   : > { %v1509_v12 = vadd.f32 %v1508_v56, %v1507_v28  ;;  %v1397_v20 = vrot.slane %v1396_v30, 2  ;;  %v813_v54 = vmax.f32 %v2909_v21, 1.0  ;;  %v1392_v51 = vrot.slane %v1391_v1, 1 }
 0x447   : > { %v1503_v13 = vmul.f32 %v2501_v16, %v1499_v32  ;;  %v1519_v26 = vsel %vm1504_vm10, %v1502_v2, 0.0  ;;  %v1384_v6 = vadd.f32 %v1383_v55, %v1382_v63  ;;  %v1404_v46 = vrot.slane %v1403_v19, 2 }
 0x448   : > { %v1520_v0 = vrot.slane %v1519_v26, 4  ;;  %v1510_v61 = vrot.slane %v1509_v12, 1  ;;  %v1398_v32 = vadd.f32 %v1397_v20, %v1396_v30  ;;  %2126 = vrcp.f32 %v813_v54 }
 0x449   : > { %v1526_v15 = vsel %vm1504_vm10, %v1503_v13, 0.0  ;;  %v2121_v14 = vpop.eup %2120  ;;  %v1405_v45 = vadd.f32 %v1404_v46, %v1403_v19  ;;  %v1393_v5 = vadd.f32 %v1392_v51, %v1391_v1  ;;  %vm816_vm0 = vcmp.gt.f32.partialorder %v2904_v34, 0.0  ;;  %v828_v46 = vpop.xlane.xlu1 %827 }
 0x44a   : > { %v1527_v33 = vrot.slane %v1526_v15, 4  ;;  %v1521_v41 = vadd.f32 %v1520_v0, %v1519_v26  ;;  %v1511_v35 = vadd.f32 %v1510_v61, %v1509_v12  ;;  %v2123_v2 = vpop.eup %2122  ;;  %v1399_v13 = vrot.slane %v1398_v32, 1 }
 0x44b   : > { %v1406_v43 = vrot.slane %v1405_v45, 1  ;;  %v1411_v62 = vmul.f32 %v2121_v14, %v1393_v5  ;;  %vm817_vm12 = vcmp.gt.f32.partialorder %v2909_v21, 0.0 }
 0x44c   : > { %v1522_v48 = vrot.slane %v1521_v41, 2  ;;  %v1533_v25 = vmul.f32 %v2123_v2, %v1511_v35  ;;  %v1400_v26 = vadd.f32 %v1399_v13, %v1398_v32  ;;  %v838_v35 = vsub.f32 %v828_v46, %v2669_v40 }
 0x44d   : > { %v1407_v30 = vadd.f32 %v1406_v43, %v1405_v45  ;;  %v1729_v19 = vsel %vm815_vm11, %v1411_v62, %v2395_v11 }
 0x44e   : > { %v1523_v44 = vadd.f32 %v1522_v48, %v1521_v41  ;;  %v1732_v22 = vsel %vm814_vm5, %v1533_v25, %v2386_v8 }
 0x450   : > { %v1524_v56 = vrot.slane %v1523_v44, 1 }
 0x452   : > { %v1525_v12 = vadd.f32 %v1524_v56, %v1523_v44 }
 0x453   : > { %1683 = vadd.xlane.f32.xlu0 %v2648_v17  ;;  %v1516_v17 = vadd.f32 %v1515_v27, %v1514_v53  ;;  %v1385_v53 = vrot.slane %v1384_v6, 1 }
 0x455   : > { %v1517_v52 = vrot.slane %v1516_v17, 1  ;;  %v1386_v24 = vadd.f32 %v1385_v53, %v1384_v6 }
 0x457   : > { %1686 = vadd.xlane.f32.xlu1 %v2659_v37  ;;  %v1528_v37 = vadd.f32 %v1527_v33, %v1526_v15  ;;  %v1518_v38 = vadd.f32 %v1517_v52, %v1516_v17  ;;  %v2125_v15 = vpop.eup %2124  ;;  %v1409_v49 = vmul.f32 %v2123_v2, %v1386_v24  ;;  %v850_v2 = vmul.f32 5.0, %v838_v35 }
 0x458   : > { %v2127_v17 = vpop.eup %2126  ;;  %v1413_v33 = vmul.f32 %v2125_v15, %v1400_v26 }
 0x459   : > { %v1529_v10 = vrot.slane %v1528_v37, 2  ;;  %v1534_v28 = vmul.f32 %v2121_v14, %v1518_v38  ;;  %v1728_v55 = vsel %vm814_vm5, %v1409_v49, %v2386_v8  ;;  %v1415_v20 = vmul.f32 %v2127_v17, %v1407_v30  ;;  %v837_v38 = vpop.xlane.xlu1 %836 }
 0x45a   : > { %v1730_v52 = vsel %vm816_vm0, %v1413_v33, %v2680_v50  ;;  %v854_v44 = vmul.f32 %v850_v2, %v838_v35  ;;  %v841_v25 = vsub.f32 %v837_v38, %v2703_v59 }
 0x45b   : > { %v1530_v27 = vadd.f32 %v1529_v10, %v1528_v37  ;;  %v1733_v63 = vsel %vm815_vm11, %v1534_v28, %v2395_v11  ;;  %v1535_v11 = vmul.f32 %v2125_v15, %v1525_v12  ;;  %v1731_v1 = vsel %vm817_vm12, %v1415_v20, %v2672_v42  ;;  %v831_v37 = vpop.xlane.xlu0 %830 }
 0x45c   : > { %v842_v10 = vand.u32 2147483647, %v838_v35  ;;  %v853_v56 = vmul.f32 5.0, %v841_v25 }
 0x45d   : > { %v1531_v0 = vrot.slane %v1530_v27, 1  ;;  %v1734_v8 = vsel %vm816_vm0, %v1535_v11, %v2680_v50  ;;  %v2945_v32 = vpop.xlane.xlu1 %1677  ;;  %v839_v50 = vsub.f32 %v831_v37, %v2677_v36  ;;  %v845_v36 = vand.u32 2147483647, %v841_v25 }
 0x45e   : > { %v1969_v24 = vadd.f32 -0.05, %v842_v10  ;;  %vm846_vm13 = vcmp.lt.f32.partialorder %v842_v10, 0.1  ;;  %v819_v37 = vmul.f32 %v2490_v47, %v2361_v39  ;;  %v820_v39 = vmul.f32 %v2494_v7, %v2366_v31 }
 0x45f   : > { %v1532_v41 = vadd.f32 %v1531_v0, %v1530_v27  ;;  %v834_v51 = vpop.xlane.xlu0 %833  ;;  %v851_v5 = vmul.f32 5.0, %v839_v50  ;;  %v1972_v33 = vadd.f32 -0.05, %v845_v36  ;;  %vm849_vm1 = vcmp.lt.f32.partialorder %v845_v36, 0.1 }
 0x460   : > { %v840_v13 = vsub.f32 %v834_v51, %v2685_v57  ;;  %v862_v15 = vsel %vm846_vm13, %v854_v44, %v1969_v24 }
 0x461   : > { %v1536_v61 = vmul.f32 %v2127_v17, %v1532_v41 }
 0x462   : > { %v844_v40 = vand.u32 2147483647, %v840_v13  ;;  %v852_v62 = vmul.f32 5.0, %v840_v13 }
 0x463   : > { %v1735_v6 = vsel %vm817_vm12, %v1536_v61, %v2672_v42  ;;  %v2947_v48 = vpop.xlane.xlu0 %1680  ;;  %v843_v42 = vand.u32 2147483647, %v839_v50 }
 0x464   : > { %v856_v49 = vmul.f32 %v852_v62, %v840_v13  ;;  %v1971_v57 = vadd.f32 -0.05, %v844_v40  ;;  %vm848_vm15 = vcmp.lt.f32.partialorder %v844_v40, 0.1 }
 0x465   : > { %v1970_v26 = vadd.f32 -0.05, %v843_v42  ;;  %vm847_vm14 = vcmp.lt.f32.partialorder %v843_v42, 0.1  ;;  %v821_v42 = vmul.f32 %v2501_v16, %v2368_v18 }
 0x466   : > { %v864_v11 = vsel %vm848_vm15, %v856_v49, %v1971_v57 }
 0x468   : > { %1799 = vrot.lane.b32.xlu1 %v1733_v63, %s2166_s27  ;;  %v855_v63 = vmul.f32 %v851_v5, %v839_v50 }
 0x469   : > { %1797 = vrot.lane.b32.xlu0 %v1732_v22, %s2166_s27 }
 0x46a   : > { %v863_v30 = vsel %vm847_vm14, %v855_v63, %v1970_v26 }
 0x46c   : > { %1763 = vrot.lane.b32.xlu1 %v1729_v19, %s2167_s28  ;;  %v857_v19 = vmul.f32 %v853_v56, %v841_v25  ;;  %v1098_v25 = vmul.f32 4.0, %v813_v54 }
 0x46d   : > { %1761 = vrot.lane.b32.xlu0 %v1728_v55, %s2167_s28  ;;  %v818_v55 = vmul.f32 %v2485_v60, %v2356_v3  ;;  %v1096_v3 = vmul.f32 4.0, %v811_v58  ;;  %v1097_v58 = vmul.f32 4.0, %v812_v9 }
 0x470   : > { %1765 = vrot.lane.b32.xlu1 %v1730_v52, %s2167_s28  ;;  %v1095_v52 = vmul.f32 4.0, %v810_v23 }
 0x471   : > { %1767 = vrot.lane.b32.xlu0 %v1731_v1, %s2167_s28 }
 0x472   : > { %2128 = vrcp.f32 %v1095_v52 }
 0x473   : > { %2130 = vrcp.f32 %v1096_v3 }
 0x474   : > { %1801 = vrot.lane.b32.xlu1 %v1734_v8, %s2166_s27  ;;  %2132 = vrcp.f32 %v1097_v58 }
 0x475   : > { %1803 = vrot.lane.b32.xlu0 %v1735_v6, %s2166_s27  ;;  %v865_v6 = vsel %vm849_vm1, %v857_v19, %v1972_v33  ;;  %2134 = vrcp.f32 %v1098_v25  ;;  %v2140_v33 = vld [vmem:[%s2380_s12] sm:$0x1] }
 0x47c   : > { %v2129_v56 = vpop.eup %2128 }
 0x47d   : > { %v2131_v57 = vpop.eup %2130 }
 0x482   : > { %v919_v53 = vpop.permute.xlu0 %918 }
 0x483   : > { %v930_v22 = vadd.f32 %v919_v53, %v862_v15 }
 0x486   : > { %v921_v14 = vpop.permute.xlu1 %920 }
 0x487   : > { %v931_v59 = vadd.f32 %v921_v14, %v863_v30 }
 0x48b   : > { %v923_v45 = vpop.permute.xlu1 %922 }
 0x48c   : > { %v983_v28 = vpop.permute.xlu0 %982  ;;  %v932_v8 = vadd.f32 %v923_v45, %v864_v11  ;;  %v2133_v11 = vpop.eup %2132 }
 0x48d   : > { %v994_v0 = vadd.f32 %v983_v28, %v930_v22 }
 0x48f   : > { %v985_v43 = vpop.permute.xlu1 %984 }
 0x490   : > { %v995_v41 = vadd.f32 %v985_v43, %v931_v59 }
 0x496   : > { %v925_v27 = vpop.permute.xlu0 %924 }
 0x497   : > { %v933_v51 = vadd.f32 %v925_v27, %v865_v6  ;;  %v2135_v6 = vpop.eup %2134 }
 0x49d   : > { %v987_v17 = vpop.permute.xlu1 %986 }
 0x49e   : > { %v1047_v12 = vpop.permute.xlu0 %1046  ;;  %v996_v35 = vadd.f32 %v987_v17, %v932_v8 }
 0x49f   : > { %v1058_v20 = vadd.f32 %v1047_v12, %v994_v0 }
 0x4a1   : > { %v1062_v1 = vmul.f32 %v1058_v20, %v818_v55  ;;  %v1049_v61 = vpop.permute.xlu1 %1048 }
 0x4a2   : > { %v989_v46 = vpop.permute.xlu0 %988  ;;  %v1059_v38 = vadd.f32 %v1049_v61, %v995_v41  ;;  %v2141_v41 = vld [vmem:[%s2380_s12 + $0x1] sm:$0x1] }
 0x4a3   : > { %v1067_v14 = vsel %vm1066_vm6, %v1062_v1, 0.0  ;;  %v997_v23 = vadd.f32 %v989_v46, %v933_v51 }
 0x4a4   : > { %v1068_v60 = vrot.slane %v1067_v14, 4  ;;  %v1063_v53 = vmul.f32 %v1059_v38, %v819_v37 }
 0x4a5   : > { %v1051_v50 = vpop.permute.xlu1 %1050 }
 0x4a6   : > { %v1069_v10 = vadd.f32 %v1068_v60, %v1067_v14  ;;  %v1074_v45 = vsel %vm1066_vm6, %v1063_v53, 0.0  ;;  %v1053_v2 = vpop.permute.xlu0 %1052  ;;  %v1060_v47 = vadd.f32 %v1051_v50, %v996_v35  ;;  %v2143_v14 = vld [vmem:[%s2380_s12 + $0x3] sm:$0x1]  ;;  %v1689_v50 = vmul.f32 0.0625, %v2947_v48 }
 0x4a7   : > { %v1075_v28 = vrot.slane %v1074_v45, 4  ;;  %v1061_v5 = vadd.f32 %v1053_v2, %v997_v23  ;;  %v1688_v23 = vmul.f32 0.0625, %v2945_v32 }
 0x4a8   : > { %v1070_v13 = vrot.slane %v1069_v10, 2  ;;  %v1064_v44 = vmul.f32 %v1060_v47, %v820_v39  ;;  %v1830_v2 = vsel %vm1737_vm7, %v1689_v50, 0.0 }
 0x4a9   : > { %v1076_v24 = vadd.f32 %v1075_v28, %v1074_v45  ;;  %v1065_v43 = vmul.f32 %v1061_v5, %v821_v42  ;;  %v1829_v45 = vsel %vm1737_vm7, %v1688_v23, 0.0 }
 0x4aa   : > { %v1071_v27 = vadd.f32 %v1070_v13, %v1069_v10  ;;  %v1081_v31 = vsel %vm1066_vm6, %v1064_v44, 0.0  ;;  %v1831_v39 = vadd.f32 %v1830_v2, %v1829_v45 }
 0x4ab   : > { %v1077_v7 = vrot.slane %v1076_v24, 2  ;;  %v1088_v63 = vsel %vm1066_vm6, %v1065_v43, 0.0  ;;  %v1082_v40 = vrot.slane %v1081_v31, 4 }
 0x4ac   : > { %v1072_v18 = vrot.slane %v1071_v27, 1  ;;  %v1089_v16 = vrot.slane %v1088_v63, 4 }
 0x4ad   : > { %v1078_v9 = vadd.f32 %v1077_v7, %v1076_v24  ;;  %v1083_v62 = vadd.f32 %v1082_v40, %v1081_v31 }
 0x4ae   : > { %v1073_v26 = vadd.f32 %v1072_v18, %v1071_v27  ;;  %v1090_v36 = vadd.f32 %v1089_v16, %v1088_v63 }
 0x4af   : > { %v1079_v54 = vrot.slane %v1078_v9, 1  ;;  %v1084_v15 = vrot.slane %v1083_v62, 2 }
 0x4b0   : > { %v1100_v22 = vmul.f32 %v2129_v56, %v1073_v26  ;;  %v1091_v49 = vrot.slane %v1090_v36, 2 }
 0x4b1   : > { %v1080_v30 = vadd.f32 %v1079_v54, %v1078_v9  ;;  %v1085_v0 = vadd.f32 %v1084_v15, %v1083_v62 }
 0x4b2   : > { %v1092_v17 = vadd.f32 %v1091_v49, %v1090_v36  ;;  %v1692_v12 = vsel %vm814_vm5, %v1100_v22, %v2140_v33 }
 0x4b3   : > { %v1102_v19 = vmul.f32 %v2131_v57, %v1080_v30  ;;  %v1086_v59 = vrot.slane %v1085_v0, 1  ;;  %v1738_v61 = vsel %vm1737_vm7, %v1692_v12, 0.0 }
 0x4b4   : > { %v1093_v55 = vrot.slane %v1092_v17, 1 }
 0x4b5   : > { %v1087_v20 = vadd.f32 %v1086_v59, %v1085_v0  ;;  %v1693_v52 = vsel %vm815_vm11, %v1102_v19, %v2141_v41 }
 0x4b6   : > { %v1094_v1 = vadd.f32 %v1093_v55, %v1092_v17  ;;  %v1739_v8 = vsel %vm1737_vm7, %v1693_v52, 0.0 }
 0x4b7   : > { %v1104_v46 = vmul.f32 %v2133_v11, %v1087_v20  ;;  %v1740_v37 = vadd.f32 %v1739_v8, %v1738_v61 }
 0x4b8   : > { %v1106_v38 = vmul.f32 %v2135_v6, %v1094_v1 }
 0x4b9   : > { %v1694_v51 = vsel %vm816_vm0, %v1104_v46, %v2142_v4 }
 0x4ba   : > { %v1695_v3 = vsel %vm817_vm12, %v1106_v38, %v2143_v14  ;;  %v1741_v29 = vsel %vm1737_vm7, %v1694_v51, 0.0 }
 0x4bb   : > { %v1742_v60 = vadd.f32 %v1741_v29, %v1740_v37  ;;  %v1743_v35 = vsel %vm1737_vm7, %v1695_v3, 0.0 }
 0x4bd   : > { %v1744_v53 = vadd.f32 %v1743_v35, %v1742_v60 }
 0x4bf   : > { %1745 = vadd.xlane.f32.xlu1 %v1744_v53  ;;  %v3029_v53 = vld [vmem:[#allocation2_spill] sm:$0xff] }
 0x4c0   : > { %vm1756_vm8 = vcmp.eq.s32.totalorder %v3029_v53, 1  ;;  %vm1736_vm2 = vcmp.eq.s32.totalorder %v3029_v53, 0  ;;  %vm1792_vm9 = vcmp.eq.s32.totalorder %v3029_v53, 2  ;;  %vm1828_vm3 = vcmp.eq.s32.totalorder %v3029_v53, 3 }
 0x4e0   : > { %v1684_v10 = vpop.xlane.xlu0 %1683 }
 0x4e1   : > { %v1690_v34 = vmul.f32 0.0625, %v1684_v10 }
 0x4e3   : > { %v1832_v21 = vsel %vm1737_vm7, %v1690_v34, 0.0 }
 0x4e4   : > { %v1798_v47 = vpop.permute.xlu0 %1797  ;;  %v1687_v28 = vpop.xlane.xlu1 %1686  ;;  %v1833_v5 = vadd.f32 %v1832_v21, %v1831_v39 }
 0x4e5   : > { %v1691_v42 = vmul.f32 0.0625, %v1687_v28  ;;  %v1809_v18 = vsel %vm1737_vm7, %v1798_v47, 0.0 }
 0x4e7   : > { %v1834_v58 = vsel %vm1737_vm7, %v1691_v42, 0.0 }
 0x4e8   : > { %v1835_v13 = vadd.f32 %v1834_v58, %v1833_v5  ;;  %v1762_v44 = vpop.permute.xlu0 %1761  ;;  %v1800_v32 = vpop.permute.xlu1 %1799 }
 0x4e9   : > { %v1773_v43 = vsel %vm1737_vm7, %v1762_v44, 0.0  ;;  %v1810_v7 = vsel %vm1737_vm7, %v1800_v32, 0.0 }
 0x4ea   : > { %1836 = vadd.xlane.f32.xlu1 %v1835_v13  ;;  %v1811_v9 = vadd.f32 %v1810_v7, %v1809_v18 }
 0x4ec   : > { %v1764_v48 = vpop.permute.xlu1 %1763  ;;  %v1768_v24 = vpop.permute.xlu0 %1767 }
 0x4ed   : > { %v1774_v25 = vsel %vm1737_vm7, %v1764_v48, 0.0  ;;  %v1778_v16 = vsel %vm1737_vm7, %v1768_v24, 0.0 }
 0x4ee   : > { %v1775_v27 = vadd.f32 %v1774_v25, %v1773_v43 }
 0x4f0   : > { %v1766_v31 = vpop.permute.xlu1 %1765  ;;  %v1804_v62 = vpop.permute.xlu0 %1803 }
 0x4f1   : > { %v1776_v63 = vsel %vm1737_vm7, %v1766_v31, 0.0  ;;  %v1814_v15 = vsel %vm1737_vm7, %v1804_v62, 0.0 }
 0x4f2   : > { %v1777_v40 = vadd.f32 %v1776_v63, %v1775_v27 }
 0x4f4   : > { %v1779_v26 = vadd.f32 %v1778_v16, %v1777_v40  ;;  %v1802_v36 = vpop.permute.xlu1 %1801 }
 0x4f5   : > { %v1812_v56 = vsel %vm1737_vm7, %v1802_v36, 0.0 }
 0x4f6   : > { %v1813_v54 = vadd.f32 %v1812_v56, %v1811_v9  ;;  %1780 = vadd.xlane.f32.xlu0 %v1779_v26 }
 0x4f8   : > { %v1815_v22 = vadd.f32 %v1814_v15, %v1813_v54 }
 0x4fa   : > { %1816 = vadd.xlane.f32.xlu0 %v1815_v22 }
 0x54c   : > { %v1746_v49 = vpop.xlane.xlu1 %1745 }
 0x54d   : > { %v1747_v30 = vrot.slane %v1746_v49, 4 }
 0x54f   : > { %v1748_v0 = vadd.f32 %v1747_v30, %v1746_v49 }
 0x551   : > { %v1749_v57 = vrot.slane %v1748_v0, 2 }
 0x553   : > { %v1750_v17 = vadd.f32 %v1749_v57, %v1748_v0 }
 0x555   : > { %v1751_v19 = vrot.slane %v1750_v17, 1 }
 0x557   : > { %v1752_v59 = vadd.f32 %v1751_v19, %v1750_v17 }
 0x559   : > { %1999 = vpush %v1752_v59 }
 0x577   : > { %v1837_v33 = vpop.xlane.xlu1 %1836 }
 0x578   : > { %v1838_v12 = vrot.slane %v1837_v33, 4 }
 0x57a   : > { %v1839_v55 = vadd.f32 %v1838_v12, %v1837_v33 }
 0x57c   : > { %v1840_v11 = vrot.slane %v1839_v55, 2 }
 0x57e   : > { %v1841_v37 = vadd.f32 %v1840_v11, %v1839_v55 }
 0x580   : > { %v1842_v3 = vrot.slane %v1841_v37, 1 }
 0x582   : > { %v1843_v35 = vadd.f32 %v1842_v3, %v1841_v37 }
 0x583   : > { %v1781_v20 = vpop.xlane.xlu0 %1780 }
 0x584   : > { %v1782_v41 = vrot.slane %v1781_v20, 4 }
 0x586   : > { %v1783_v52 = vadd.f32 %v1782_v41, %v1781_v20 }
 0x587   : > { %v1817_v1 = vpop.xlane.xlu0 %1816 }
 0x588   : > { %v1784_v61 = vrot.slane %v1783_v52, 2  ;;  %v1818_v8 = vrot.slane %v1817_v1, 4 }
 0x58a   : > { %v1819_v6 = vadd.f32 %v1818_v8, %v1817_v1  ;;  %v1785_v46 = vadd.f32 %v1784_v61, %v1783_v52  ;;  %s2000_s29 = spop %1999 }
 0x58b   : > { %v1754_v23 = vstv %s2000_s29 }
 0x58c   : > { %v1820_v38 = vrot.slane %v1819_v6, 2  ;;  %v1786_v4 = vrot.slane %v1785_v46, 1  ;;  %v1755_v45 = vsel %vm1736_vm2, %v1754_v23, 0.0 }
 0x58e   : > { %v1821_v51 = vadd.f32 %v1820_v38, %v1819_v6  ;;  %v1787_v14 = vadd.f32 %v1786_v4, %v1785_v46 }
 0x590   : > { %2001 = vpush %v1787_v14  ;;  %v1822_v29 = vrot.slane %v1821_v51, 1 }
 0x592   : > { %v1823_v60 = vadd.f32 %v1822_v29, %v1821_v51 }
 0x594   : > { %2003 = vpush %v1823_v60 }
 0x595   : > { %2005 = vpush %v1843_v35 }
 0x5c1   : > { %s2002_s30 = spop %2001 }
 0x5c2   : > { %v1789_v50 = vstv %s2002_s30 }
 0x5c3   : > { %v1790_v10 = vsel %vm1756_vm8, %v1789_v50, 0.0 }
 0x5c4   : > { %v1791_v34 = vadd.f32 %v1790_v10, %v1755_v45 }
 0x5c5   : > { %s2004_s7 = spop %2003 }
 0x5c6   : > { %v1825_v2 = vstv %s2004_s7  ;;  %s2006_s8 = spop %2005 }
 0x5c7   : > { %v1826_v21 = vsel %vm1792_vm9, %v1825_v2, 0.0  ;;  %v1845_v39 = vstv %s2006_s8 }
 0x5c8   : > { %v1827_v47 = vadd.f32 %v1826_v21, %v1791_v34  ;;  %v1846_v28 = vsel %vm1828_vm3, %v1845_v39, 0.0 }
 0x5ca   : > { %v1847_v42 = vadd.f32 %v1846_v28, %v1827_v47 }
 0x5cc   : > { %1848 = vst [vmem:[%s350_s11] sm:$0x1] %v1847_v42 }
 0x5cd PF: > { %s16_s21 = sadd.s32 1, %s2154_s21  }
 0x5ce   : > { %p13_p5 = scmp.ge.s32.totalorder %s16_s21, 4  }
 0x5d0   :  { %15 = sbr.rel (!%p13_p5) target bundleno = 1 (0x1), region = 89 }

</bundles_post_ra>
